<compile_context>
chip_gen: v7x
topology: tpu7x:2x2x1
jax: 0.10.0
libtpu: 0.0.40
codegen_flags: <defaults>
</compile_context>

<pallas_src>
import functools
import math

import numpy as np
import jax
import jax.numpy as jnp
from jax.experimental import pallas as pl
from jax.experimental.pallas import tpu as pltpu


def _round_up(n, m):
    return ((n + m - 1) // m) * m


def _cdiv(a, b):
    return (a + b - 1) // b


def _pick_vmem_limit():
    """48 MiB on 64-MiB-VMEM parts (v7x), 64 MiB on 128-MiB parts (v5e/v6e)."""
    try:
        cap = int(pltpu.get_tpu_info().vmem_capacity_bytes)
    except Exception:
        cap = 128 * 1024 * 1024
    if cap <= 64 * 1024 * 1024:
        return 48 * 1024 * 1024
    return 64 * 1024 * 1024


# ----------------------------------------------------------------------------
# Kernel 1: fused channel-proj + LN1 + shifted-window attention + residual
# ----------------------------------------------------------------------------

def _swin_attn_kernel(*refs, num_heads, head_dim, eps, wb, img_tile,
                      has_proj, has_mask, has_valid):
    it = iter(refs)
    x_ref = next(it)
    pjw_ref = next(it) if has_proj else None
    pjb_ref = next(it) if has_proj else None
    lnw_ref = next(it)
    lnb_ref = next(it)
    qkvw_ref = next(it)
    qkvb_ref = next(it)
    pw_ref = next(it)
    pb_ref = next(it)
    bias_ref = next(it)
    mask_ref = next(it) if has_mask else None
    valid_ref = next(it) if has_valid else None
    o_ref = next(it)

    _, Ws, Cin = x_ref.shape
    C = num_heads * head_dim
    rows = wb * Ws

    # ---- (optional) channel projection Cin -> C, fused ------------------------
    xr = x_ref[...].reshape(rows, Cin)                        # (rows, Cin) f32
    if has_proj:
        x0 = jnp.dot(xr.astype(jnp.bfloat16), pjw_ref[...],
                     preferred_element_type=jnp.float32) + pjb_ref[...]
    else:
        x0 = xr                                               # (rows, C) f32

    # ---- LayerNorm 1 (f32) ------------------------------------------------------
    mu = jnp.mean(x0, axis=-1, keepdims=True)
    var = jnp.mean((x0 - mu) ** 2, axis=-1, keepdims=True)
    h = (x0 - mu) * jax.lax.rsqrt(var + eps) * lnw_ref[...] + lnb_ref[...]
    if has_valid:
        # zero padded tokens post-LN (emulates torchvision's pad-after-norm1)
        vmask = valid_ref[...]                                # (wb|num_windows, Ws)
        if vmask.shape[0] != wb:
            vmask = jnp.broadcast_to(vmask[None], (img_tile,) + vmask.shape)
            vmask = vmask.reshape(wb, Ws)
        h = (h.reshape(wb, Ws, C) * vmask[..., None]).reshape(rows, C)

    # ---- QKV projection: one tall bf16 MXU matmul over all windows --------------
    # (the q-scale is pre-folded into the Q columns of qkvw / qkvb host-side)
    qkv = jnp.dot(h.astype(jnp.bfloat16), qkvw_ref[...],
                  preferred_element_type=jnp.float32) + qkvb_ref[...]
    qkv = qkv.reshape(wb, Ws, 3 * C).astype(jnp.bfloat16)

    # ---- head-batched attention: one batched dot per phase ----------------------
    # Heads are moved onto the leading batch axis ONCE; 2 batched dots replace
    # the previous unrolled nH-way loop of small dots (better MXU cadence,
    # fewer bundles).
    q = jnp.concatenate(
        [qkv[..., hh * head_dim:(hh + 1) * head_dim] for hh in range(num_heads)],
        axis=0)                                               # (nH*wb, Ws, hd)
    k = jnp.concatenate(
        [qkv[..., C + hh * head_dim:C + (hh + 1) * head_dim]
         for hh in range(num_heads)], axis=0)
    v = jnp.concatenate(
        [qkv[..., 2 * C + hh * head_dim:2 * C + (hh + 1) * head_dim]
         for hh in range(num_heads)], axis=0)

    s = jnp.einsum('bqd,bkd->bqk', q, k,
                   preferred_element_type=jnp.float32)        # (nH*wb, Ws, Ws)
    s = s.reshape(num_heads, wb, Ws, Ws) + bias_ref[...][:, None]   # rel-pos bias
    if has_mask:
        m = mask_ref[...]                                     # (wb | num_windows, Ws, Ws)
        if m.shape[0] == wb:
            s = s + m[None]                                   # broadcast over heads
        else:                                                 # whole-image steps
            nw = m.shape[0]
            s = (s.reshape(num_heads, img_tile, nw, Ws, Ws) + m[None, None]
                 ).reshape(num_heads, wb, Ws, Ws)
    s = s.reshape(num_heads * wb, Ws, Ws)

    s = s - jnp.max(s, axis=-1, keepdims=True)
    p = jnp.exp(s)
    p = p * pl.reciprocal(jnp.sum(p, axis=-1, keepdims=True), approx=True)
    ctx = jnp.einsum('bqk,bkd->bqd', p.astype(jnp.bfloat16), v,
                     preferred_element_type=jnp.float32)      # (nH*wb, Ws, hd)

    # back to token-major (rows, C) with one lane concat, then a single
    # well-filled 2-D out-projection matmul
    ctx = jnp.concatenate(
        [ctx[hh * wb:(hh + 1) * wb] for hh in range(num_heads)], axis=-1)
    ctx = ctx.reshape(rows, C).astype(jnp.bfloat16)

    out = x0 + jnp.dot(ctx, pw_ref[...],
                       preferred_element_type=jnp.float32) + pb_ref[...]
    o_ref[...] = out.reshape(wb, Ws, C).astype(o_ref.dtype)


def _choose_windows_per_step(NWt, num_windows, Ws, *, target_rows=512,
                             min_steps=4):
    """Windows per grid step: as many as the row target allows, but guarantee a
    grid of at least ~min_steps steps so the pipeline double-buffers and the
    'parallel' axis can shard across TensorCores (v7x megacore)."""
    desired_steps = min(min_steps, NWt)
    wb_cap = max(1, min(NWt // desired_steps, max(1, target_rows // Ws)))
    best = 1
    for cand in range(1, wb_cap + 1):
        if NWt % cand:
            continue
        # shift-mask / pad-valid index maps need window-aligned steps:
        # either whole images per step, or an integer fraction of one image.
        if cand % num_windows and num_windows % cand:
            continue
        best = cand
    return best


def window_attention(xw, pp, mask, valid, *, num_heads, num_windows, wb,
                     vmem_limit):
    NWt, Ws, Cin = xw.shape
    C = pp["ln1_w"].shape[-1]
    head_dim = C // num_heads
    has_proj = pp.get("proj_w") is not None
    has_mask = mask is not None
    has_valid = valid is not None
    img_tile = max(1, wb // num_windows)
    win_blocks = max(1, num_windows // wb)
    grid = (NWt // wb,)

    kernel = functools.partial(
        _swin_attn_kernel, num_heads=num_heads, head_dim=head_dim, eps=1e-5,
        wb=wb, img_tile=img_tile,
        has_proj=has_proj, has_mask=has_mask, has_valid=has_valid)

    in_specs = [pl.BlockSpec((wb, Ws, Cin), lambda i: (i, 0, 0))]
    args = [xw]
    if has_proj:
        in_specs += [pl.BlockSpec((Cin, C), lambda i: (0, 0)),
                     pl.BlockSpec((1, C), lambda i: (0, 0))]
        args += [pp["proj_w"], pp["proj_b"]]
    in_specs += [pl.BlockSpec((1, C), lambda i: (0, 0)),
                 pl.BlockSpec((1, C), lambda i: (0, 0)),
                 pl.BlockSpec((C, 3 * C), lambda i: (0, 0)),
                 pl.BlockSpec((1, 3 * C), lambda i: (0, 0)),
                 pl.BlockSpec((C, C), lambda i: (0, 0)),
                 pl.BlockSpec((1, C), lambda i: (0, 0)),
                 pl.BlockSpec((num_heads, Ws, Ws), lambda i: (0, 0, 0))]
    args += [pp["ln1_w"], pp["ln1_b"], pp["qkv_w"], pp["qkv_b"],
             pp["attn_proj_w"], pp["attn_proj_b"], pp["rel_bias"]]
    if has_mask:
        mb = min(wb, num_windows)          # never tiled by the batch dimension
        in_specs += [pl.BlockSpec((mb, Ws, Ws),
                                  lambda i: (i % win_blocks, 0, 0))]
        args += [mask]
    if has_valid:
        vb = min(wb, num_windows)
        in_specs += [pl.BlockSpec((vb, Ws), lambda i: (i % win_blocks, 0))]
        args += [valid]

    return pl.pallas_call(
        kernel,
        out_shape=jax.ShapeDtypeStruct((NWt, Ws, C), xw.dtype),
        grid_spec=pltpu.PrefetchScalarGridSpec(
            num_scalar_prefetch=0,
            grid=grid,
            in_specs=in_specs,
            out_specs=pl.BlockSpec((wb, Ws, C), lambda i: (i, 0, 0)),
        ),
        compiler_params=pltpu.CompilerParams(
            dimension_semantics=("parallel",),
            vmem_limit_bytes=vmem_limit),
    )(*args)


# ----------------------------------------------------------------------------
# Kernel 2: fused LN2 + MLP (erf-GELU) + residual
# ----------------------------------------------------------------------------

def _mlp_kernel(x1_ref, lnw_ref, lnb_ref, w1_ref, b1_ref, w2_ref, b2_ref,
                o_ref, *, eps, approx_gelu):
    x1 = x1_ref[...]
    mu = jnp.mean(x1, axis=-1, keepdims=True)
    var = jnp.mean((x1 - mu) ** 2, axis=-1, keepdims=True)
    h = (x1 - mu) * jax.lax.rsqrt(var + eps) * lnw_ref[...] + lnb_ref[...]
    h1 = jnp.dot(h.astype(jnp.bfloat16), w1_ref[...],
                 preferred_element_type=jnp.float32) + b1_ref[...]
    if approx_gelu:
        g = jax.nn.gelu(h1, approximate=True)        # tanh -> EUP slot
    else:
        # exact (erf) GELU, matching nn.GELU default
        g = 0.5 * h1 * (1.0 + jax.lax.erf(h1 * (1.0 / math.sqrt(2.0))))
    h2 = jnp.dot(g.astype(jnp.bfloat16), w2_ref[...],
                 preferred_element_type=jnp.float32) + b2_ref[...]
    o_ref[...] = (x1 + h2).astype(o_ref.dtype)


def mlp_block(x1, pp, *, eps=1e-5, max_tile=512, min_steps=4,
              approx_gelu=False, vmem_limit=64 * 1024 * 1024):
    N, C = x1.shape
    hidden = pp["fc1_w"].shape[1]
    # row tile: as large as allowed but small enough that the grid has at least
    # `min_steps` steps (pipelining / megacore sharding)
    tile = max(8, min(max_tile, _round_up(_cdiv(N, min_steps), 8)))
    Np = _round_up(N, tile)
    xp = jnp.pad(x1, ((0, Np - N), (0, 0))) if Np != N else x1
    kernel = functools.partial(_mlp_kernel, eps=eps, approx_gelu=approx_gelu)
    out = pl.pallas_call(
        kernel,
        out_shape=jax.ShapeDtypeStruct((Np, C), x1.dtype),
        grid_spec=pltpu.PrefetchScalarGridSpec(
            num_scalar_prefetch=0,
            grid=(Np // tile,),
            in_specs=[
                pl.BlockSpec((tile, C), lambda i: (i, 0)),
                pl.BlockSpec((1, C), lambda i: (0, 0)),
                pl.BlockSpec((1, C), lambda i: (0, 0)),
                # resident bf16 weights (constant index maps)
                pl.BlockSpec((C, hidden), lambda i: (0, 0)),
                pl.BlockSpec((1, hidden), lambda i: (0, 0)),
                pl.BlockSpec((hidden, C), lambda i: (0, 0)),
                pl.BlockSpec((1, C), lambda i: (0, 0)),
            ],
            out_specs=pl.BlockSpec((tile, C), lambda i: (i, 0)),
        ),
        compiler_params=pltpu.CompilerParams(
            dimension_semantics=("parallel",),
            vmem_limit_bytes=vmem_limit),
    )(xp, pp["ln2_w"], pp["ln2_b"], pp["fc1_w"], pp["fc1_b"],
      pp["fc2_w"], pp["fc2_b"])
    return out[:N] if Np != N else out


# ----------------------------------------------------------------------------
# Host-side glue (one-time weight prep, windowing, masks, bias tables)
# ----------------------------------------------------------------------------

def make_rel_pos_bias(table, window_size):
    """Gather relative-position bias table -> (num_heads, Ws, Ws)."""
    wh, ww = window_size
    coords = np.stack(np.meshgrid(np.arange(wh), np.arange(ww), indexing="ij"))
    flat = coords.reshape(2, -1)
    rel = flat[:, :, None] - flat[:, None, :]
    rel = rel.transpose(1, 2, 0).astype(np.int64)
    rel[:, :, 0] += wh - 1
    rel[:, :, 1] += ww - 1
    rel[:, :, 0] *= 2 * ww - 1
    idx = rel.sum(-1).reshape(-1)
    bias = table[idx].reshape(wh * ww, wh * ww, -1)
    return jnp.transpose(bias, (2, 0, 1))                     # (nH, Ws, Ws)


def make_attn_mask(pad_H, pad_W, window_size, shift_size):
    """torchvision-style shifted-window attention mask: (num_windows, Ws, Ws)."""
    wh, ww = window_size
    sh, sw = shift_size
    mask = np.zeros((pad_H, pad_W), dtype=np.float32)
    h_slices = ((0, pad_H - wh), (pad_H - wh, pad_H - sh), (pad_H - sh, pad_H))
    w_slices = ((0, pad_W - ww), (pad_W - ww, pad_W - sw), (pad_W - sw, pad_W))
    count = 0
    for hs in h_slices:
        for ws_ in w_slices:
            mask[hs[0]:hs[1], ws_[0]:ws_[1]] = count
            count += 1
    mask = mask.reshape(pad_H // wh, wh, pad_W // ww, ww)
    mask = mask.transpose(0, 2, 1, 3).reshape(-1, wh * ww)
    diff = mask[:, None, :] - mask[:, :, None]
    return np.where(diff != 0, np.float32(-100.0), np.float32(0.0))


def prepare_swin_params(params, *, window_size, num_heads):
    """One-time prep: fold the head scale into the Q columns, cast the big
    matmul weights to bf16, reshape biases to (1, C), gather the rel-pos bias.
    Keeps the per-forward path free of weight re-reads/casts."""
    C = params["ln1_w"].shape[0]
    hidden = params["fc1_w"].shape[1]
    head_dim = C // num_heads
    scale = np.ones((3 * C,), np.float32)
    scale[:C] = head_dim ** -0.5
    scale = jnp.asarray(scale)
    pp = {
        "ln1_w": params["ln1_w"].reshape(1, C).astype(jnp.float32),
        "ln1_b": params["ln1_b"].reshape(1, C).astype(jnp.float32),
        "qkv_w": (params["qkv_w"] * scale[None, :]).astype(jnp.bfloat16),
        "qkv_b": (params["qkv_b"] * scale).reshape(1, 3 * C).astype(jnp.float32),
        "attn_proj_w": params["attn_proj_w"].astype(jnp.bfloat16),
        "attn_proj_b": params["attn_proj_b"].reshape(1, C).astype(jnp.float32),
        "rel_bias": make_rel_pos_bias(params["rel_table"], window_size),
        "ln2_w": params["ln2_w"].reshape(1, C).astype(jnp.float32),
        "ln2_b": params["ln2_b"].reshape(1, C).astype(jnp.float32),
        "fc1_w": params["fc1_w"].astype(jnp.bfloat16),
        "fc1_b": params["fc1_b"].reshape(1, hidden).astype(jnp.float32),
        "fc2_w": params["fc2_w"].astype(jnp.bfloat16),
        "fc2_b": params["fc2_b"].reshape(1, C).astype(jnp.float32),
    }
    if params.get("proj_w") is not None:
        pp["proj_w"] = params["proj_w"].astype(jnp.bfloat16)
        pp["proj_b"] = params["proj_b"].reshape(1, C).astype(jnp.float32)
    else:
        pp["proj_w"] = None
        pp["proj_b"] = None
    return pp


def swin_block_forward(x_nchw, pp, *, window_size, shift_size, num_heads,
                       approx_gelu=False):
    B, Cin, H, W = x_nchw.shape
    C = pp["ln1_w"].shape[-1]
    vmem_limit = _pick_vmem_limit()
    big_vmem = vmem_limit >= 64 * 1024 * 1024           # v5e/v6e (128 MiB parts)
    target_rows = 1024 if big_vmem else 512
    mlp_tile = 1024 if big_vmem else 512

    x = jnp.transpose(x_nchw, (0, 2, 3, 1))             # NHWC

    wh, ww = window_size
    pad_b = (wh - H % wh) % wh
    pad_r = (ww - W % ww) % ww
    pad_H, pad_W = H + pad_b, W + pad_r
    sh, sw = shift_size
    if wh >= pad_H:
        sh = 0
    if ww >= pad_W:
        sw = 0
    shifted = (sh + sw) > 0

    xp = jnp.pad(x, ((0, 0), (0, pad_b), (0, pad_r), (0, 0))) if (pad_b or pad_r) else x
    if shifted:
        xp = jnp.roll(xp, (-sh, -sw), axis=(1, 2))

    nH_, nW_ = pad_H // wh, pad_W // ww
    num_windows = nH_ * nW_
    Ws = wh * ww
    # TODO(synk): fold the window partition/merge (and the cyclic roll) into the
    # attention pallas_call via band-shaped BlockSpecs over the padded NHWC
    # tensor; these 6-D XLA transposes cost extra full-activation HBM round trips.
    xw = xp.reshape(B, nH_, wh, nW_, ww, Cin)
    xw = xw.transpose(0, 1, 3, 2, 4, 5).reshape(B * num_windows, Ws, Cin)

    NWt = B * num_windows
    wb = _choose_windows_per_step(NWt, num_windows, Ws, target_rows=target_rows)

    mask = None
    if shifted:
        mask = jnp.asarray(make_attn_mask(pad_H, pad_W, (wh, ww), (sh, sw)))

    valid = None
    if pad_b or pad_r:
        v = np.ones((pad_H, pad_W), np.float32)
        v[H:, :] = 0.0
        v[:, W:] = 0.0
        if shifted:
            v = np.roll(v, (-sh, -sw), axis=(0, 1))
        v = v.reshape(nH_, wh, nW_, ww).transpose(0, 2, 1, 3).reshape(num_windows, Ws)
        valid = jnp.asarray(v)                          # lane-dense (nW, Ws)

    x1w = window_attention(xw, pp, mask, valid, num_heads=num_heads,
                           num_windows=num_windows, wb=wb,
                           vmem_limit=vmem_limit)

    # merge windows, undo shift, crop padding  -> x1 = x0 + attn(LN1(x0))
    x1 = x1w.reshape(B, nH_, nW_, wh, ww, C).transpose(0, 1, 3, 2, 4, 5)
    x1 = x1.reshape(B, pad_H, pad_W, C)
    if shifted:
        x1 = jnp.roll(x1, (sh, sw), axis=(1, 2))
    x1 = x1[:, :H, :W, :]

    out = mlp_block(x1.reshape(-1, C), pp, max_tile=mlp_tile,
                    approx_gelu=approx_gelu, vmem_limit=vmem_limit)
    out = out.reshape(B, H, W, C)
    return jnp.transpose(out, (0, 3, 1, 2))             # back to NCHW


# ----------------------------------------------------------------------------
# Main
# ----------------------------------------------------------------------------

if __name__ == "__main__":
    B, Cin, H, W = 2, 16, 8, 8
    Cout, n_heads = 32, 4
    window_size = (4, 4)
    shift_size = (2, 2)
    mlp_hidden = int(Cout * 4.0)

    key = jax.random.PRNGKey(0)
    keys = jax.random.split(key, 16)

    def init(k, shape, scale=0.02):
        return (scale * jax.random.normal(k, shape)).astype(jnp.float32)

    params = {
        # proj Linear (channels_in != channels_out) -- weights stored (in, out)
        "proj_w": init(keys[0], (Cin, Cout)),
        "proj_b": init(keys[1], (Cout,)),
        # norm1
        "ln1_w": jnp.ones((Cout,), jnp.float32),
        "ln1_b": jnp.zeros((Cout,), jnp.float32),
        # ShiftedWindowAttention (v1)
        "qkv_w": init(keys[2], (Cout, 3 * Cout)),
        "qkv_b": init(keys[3], (3 * Cout,)),
        "attn_proj_w": init(keys[4], (Cout, Cout)),
        "attn_proj_b": init(keys[5], (Cout,)),
        "rel_table": init(
            keys[6], ((2 * window_size[0] - 1) * (2 * window_size[1] - 1), n_heads)),
        # norm2
        "ln2_w": jnp.ones((Cout,), jnp.float32),
        "ln2_b": jnp.zeros((Cout,), jnp.float32),
        # MLP
        "fc1_w": init(keys[7], (Cout, mlp_hidden)),
        "fc1_b": init(keys[8], (mlp_hidden,)),
        "fc2_w": init(keys[9], (mlp_hidden, Cout)),
        "fc2_b": init(keys[10], (Cout,)),
    }

    x = jax.random.normal(keys[11], (B, Cin, H, W), jnp.float32)

    pp = prepare_swin_params(params, window_size=window_size, num_heads=n_heads)
    y = swin_block_forward(x, pp, window_size=window_size,
                           shift_size=shift_size, num_heads=n_heads)
    jax.block_until_ready(y)
    assert y.shape == (B, Cout, H, W), y.shape
    assert bool(jnp.all(jnp.isfinite(y)))
    print("KERNEL_OK")
</pallas_src>

<mosaic_0001>
module attributes {stable_mosaic.version = 11 : i64} {
  func.func @_swin_attn_kernel(%arg0: i32, %arg1: memref<2x16x16xf32, #tpu.memory_space<vmem>>, %arg2: memref<16x32xbf16, #tpu.memory_space<vmem>>, %arg3: memref<1x32xf32, #tpu.memory_space<vmem>>, %arg4: memref<1x32xf32, #tpu.memory_space<vmem>>, %arg5: memref<1x32xf32, #tpu.memory_space<vmem>>, %arg6: memref<32x96xbf16, #tpu.memory_space<vmem>>, %arg7: memref<1x96xf32, #tpu.memory_space<vmem>>, %arg8: memref<32x32xbf16, #tpu.memory_space<vmem>>, %arg9: memref<1x32xf32, #tpu.memory_space<vmem>>, %arg10: memref<4x16x16xf32, #tpu.memory_space<vmem>>, %arg11: memref<2x16x16xf32, #tpu.memory_space<vmem>>, %arg12: memref<2x16x32xf32, #tpu.memory_space<vmem>>) attributes {dimension_semantics = [#tpu.dimension_semantics<parallel>], iteration_bounds = array<i64: 4>, scalar_prefetch = 0 : i64, scratch_operands = 0 : i64, tpu.core_type = #tpu.core_type<tc>, window_params = [{transform_indices = @transform_0, window_bounds = array<i64: 2, 16, 16>}, {pipeline_mode = #tpu.pipeline_mode<synchronous>, transform_indices = @transform_1, window_bounds = array<i64: 16, 32>}, {pipeline_mode = #tpu.pipeline_mode<synchronous>, transform_indices = @transform_2, window_bounds = array<i64: 1, 32>}, {pipeline_mode = #tpu.pipeline_mode<synchronous>, transform_indices = @transform_3, window_bounds = array<i64: 1, 32>}, {pipeline_mode = #tpu.pipeline_mode<synchronous>, transform_indices = @transform_4, window_bounds = array<i64: 1, 32>}, {pipeline_mode = #tpu.pipeline_mode<synchronous>, transform_indices = @transform_5, window_bounds = array<i64: 32, 96>}, {pipeline_mode = #tpu.pipeline_mode<synchronous>, transform_indices = @transform_6, window_bounds = array<i64: 1, 96>}, {pipeline_mode = #tpu.pipeline_mode<synchronous>, transform_indices = @transform_7, window_bounds = array<i64: 32, 32>}, {pipeline_mode = #tpu.pipeline_mode<synchronous>, transform_indices = @transform_8, window_bounds = array<i64: 1, 32>}, {pipeline_mode = #tpu.pipeline_mode<synchronous>, transform_indices = @transform_9, window_bounds = array<i64: 4, 16, 16>}, {transform_indices = @transform_10, window_bounds = array<i64: 2, 16, 16>}, {transform_indices = @transform_11, window_bounds = array<i64: 2, 16, 32>}]} {
    %c0 = arith.constant 0 : index
    %c0_0 = arith.constant 0 : index
    %c0_1 = arith.constant 0 : index
    %0 = vector.load %arg1[%c0, %c0_0, %c0_1] : memref<2x16x16xf32, #tpu.memory_space<vmem>>, vector<2x16x16xf32>
    %1 = vector.shape_cast %0 : vector<2x16x16xf32> to vector<32x16xf32>
    %2 = arith.truncf %1 : vector<32x16xf32> to vector<32x16xbf16>
    %c0_2 = arith.constant 0 : index
    %c0_3 = arith.constant 0 : index
    %3 = vector.load %arg2[%c0_2, %c0_3] : memref<16x32xbf16, #tpu.memory_space<vmem>>, vector<16x32xbf16>
    %cst = arith.constant dense<0.000000e+00> : vector<32x32xf32>
    %4 = tpu.matmul %2, %3, %cst {dimension_numbers = #tpu.dot_dimension_numbers<[1], [0], [0], [1], [0, 0, 1, 1], [], []>} : vector<32x16xbf16>, vector<16x32xbf16>, vector<32x32xf32> -> vector<32x32xf32>
    %c0_4 = arith.constant 0 : index
    %c0_5 = arith.constant 0 : index
    %5 = vector.load %arg3[%c0_4, %c0_5] : memref<1x32xf32, #tpu.memory_space<vmem>>, vector<1x32xf32>
    %6 = vector.broadcast %5 : vector<1x32xf32> to vector<32x32xf32>
    %7 = arith.addf %4, %6 : vector<32x32xf32>
    %cst_6 = arith.constant dense<0.000000e+00> : vector<32xf32>
    %8 = vector.multi_reduction <add>, %7, %cst_6 [1] : vector<32x32xf32> to vector<32xf32>
    %9 = vector.shape_cast %8 : vector<32xf32> to vector<32x1xf32>
    %cst_7 = arith.constant 3.200000e+01 : f32
    %10 = vector.broadcast %cst_7 : f32 to vector<32x1xf32>
    %11 = arith.divf %9, %10 : vector<32x1xf32>
    %12 = vector.broadcast %11 : vector<32x1xf32> to vector<32x32xf32>
    %13 = arith.subf %7, %12 : vector<32x32xf32>
    %14 = arith.mulf %13, %13 : vector<32x32xf32>
    %cst_8 = arith.constant dense<0.000000e+00> : vector<32xf32>
    %15 = vector.multi_reduction <add>, %14, %cst_8 [1] : vector<32x32xf32> to vector<32xf32>
    %16 = vector.shape_cast %15 : vector<32xf32> to vector<32x1xf32>
    %cst_9 = arith.constant 3.200000e+01 : f32
    %17 = vector.broadcast %cst_9 : f32 to vector<32x1xf32>
    %18 = arith.divf %16, %17 : vector<32x1xf32>
    %19 = vector.broadcast %11 : vector<32x1xf32> to vector<32x32xf32>
    %20 = arith.subf %7, %19 : vector<32x32xf32>
    %cst_10 = arith.constant 9.99999974E-6 : f32
    %21 = vector.broadcast %cst_10 : f32 to vector<32x1xf32>
    %22 = arith.addf %18, %21 : vector<32x1xf32>
    %23 = math.rsqrt %22 : vector<32x1xf32>
    %24 = vector.broadcast %23 : vector<32x1xf32> to vector<32x32xf32>
    %25 = arith.mulf %20, %24 : vector<32x32xf32>
    %c0_11 = arith.constant 0 : index
    %c0_12 = arith.constant 0 : index
    %26 = vector.load %arg4[%c0_11, %c0_12] : memref<1x32xf32, #tpu.memory_space<vmem>>, vector<1x32xf32>
    %27 = vector.broadcast %26 : vector<1x32xf32> to vector<32x32xf32>
    %28 = arith.mulf %25, %27 : vector<32x32xf32>
    %c0_13 = arith.constant 0 : index
    %c0_14 = arith.constant 0 : index
    %29 = vector.load %arg5[%c0_13, %c0_14] : memref<1x32xf32, #tpu.memory_space<vmem>>, vector<1x32xf32>
    %30 = vector.broadcast %29 : vector<1x32xf32> to vector<32x32xf32>
    %31 = arith.addf %28, %30 : vector<32x32xf32>
    %32 = arith.truncf %31 : vector<32x32xf32> to vector<32x32xbf16>
    %c0_15 = arith.constant 0 : index
    %c0_16 = arith.constant 0 : index
    %33 = vector.load %arg6[%c0_15, %c0_16] : memref<32x96xbf16, #tpu.memory_space<vmem>>, vector<32x96xbf16>
    %cst_17 = arith.constant dense<0.000000e+00> : vector<32x96xf32>
    %34 = tpu.matmul %32, %33, %cst_17 {dimension_numbers = #tpu.dot_dimension_numbers<[1], [0], [0], [1], [0, 0, 1, 1], [], []>} : vector<32x32xbf16>, vector<32x96xbf16>, vector<32x96xf32> -> vector<32x96xf32>
    %c0_18 = arith.constant 0 : index
    %c0_19 = arith.constant 0 : index
    %35 = vector.load %arg7[%c0_18, %c0_19] : memref<1x96xf32, #tpu.memory_space<vmem>>, vector<1x96xf32>
    %36 = vector.broadcast %35 : vector<1x96xf32> to vector<32x96xf32>
    %37 = arith.addf %34, %36 : vector<32x96xf32>
    %38 = vector.shape_cast %37 : vector<32x96xf32> to vector<2x16x96xf32>
    %39 = arith.truncf %38 : vector<2x16x96xf32> to vector<2x16x96xbf16>
    %40 = vector.extract_strided_slice %39 {offsets = [0, 0, 0], sizes = [2, 16, 8], strides = [1, 1, 1]} : vector<2x16x96xbf16> to vector<2x16x8xbf16>
    %41 = vector.extract_strided_slice %39 {offsets = [0, 0, 8], sizes = [2, 16, 8], strides = [1, 1, 1]} : vector<2x16x96xbf16> to vector<2x16x8xbf16>
    %42 = vector.extract_strided_slice %39 {offsets = [0, 0, 16], sizes = [2, 16, 8], strides = [1, 1, 1]} : vector<2x16x96xbf16> to vector<2x16x8xbf16>
    %43 = vector.extract_strided_slice %39 {offsets = [0, 0, 24], sizes = [2, 16, 8], strides = [1, 1, 1]} : vector<2x16x96xbf16> to vector<2x16x8xbf16>
    %44 = tpu.concatenate %40, %41, %42, %43 in 0 : vector<2x16x8xbf16>, vector<2x16x8xbf16>, vector<2x16x8xbf16>, vector<2x16x8xbf16> -> vector<8x16x8xbf16>
    %45 = vector.extract_strided_slice %39 {offsets = [0, 0, 32], sizes = [2, 16, 8], strides = [1, 1, 1]} : vector<2x16x96xbf16> to vector<2x16x8xbf16>
    %46 = vector.extract_strided_slice %39 {offsets = [0, 0, 40], sizes = [2, 16, 8], strides = [1, 1, 1]} : vector<2x16x96xbf16> to vector<2x16x8xbf16>
    %47 = vector.extract_strided_slice %39 {offsets = [0, 0, 48], sizes = [2, 16, 8], strides = [1, 1, 1]} : vector<2x16x96xbf16> to vector<2x16x8xbf16>
    %48 = vector.extract_strided_slice %39 {offsets = [0, 0, 56], sizes = [2, 16, 8], strides = [1, 1, 1]} : vector<2x16x96xbf16> to vector<2x16x8xbf16>
    %49 = tpu.concatenate %45, %46, %47, %48 in 0 : vector<2x16x8xbf16>, vector<2x16x8xbf16>, vector<2x16x8xbf16>, vector<2x16x8xbf16> -> vector<8x16x8xbf16>
    %50 = vector.extract_strided_slice %39 {offsets = [0, 0, 64], sizes = [2, 16, 8], strides = [1, 1, 1]} : vector<2x16x96xbf16> to vector<2x16x8xbf16>
    %51 = vector.extract_strided_slice %39 {offsets = [0, 0, 72], sizes = [2, 16, 8], strides = [1, 1, 1]} : vector<2x16x96xbf16> to vector<2x16x8xbf16>
    %52 = vector.extract_strided_slice %39 {offsets = [0, 0, 80], sizes = [2, 16, 8], strides = [1, 1, 1]} : vector<2x16x96xbf16> to vector<2x16x8xbf16>
    %53 = vector.extract_strided_slice %39 {offsets = [0, 0, 88], sizes = [2, 16, 8], strides = [1, 1, 1]} : vector<2x16x96xbf16> to vector<2x16x8xbf16>
    %54 = tpu.concatenate %50, %51, %52, %53 in 0 : vector<2x16x8xbf16>, vector<2x16x8xbf16>, vector<2x16x8xbf16>, vector<2x16x8xbf16> -> vector<8x16x8xbf16>
    "tpu.trace_start"() <{level = 10 : i32, message = "bqd,bkd->bqk"}> : () -> ()
    %cst_20 = arith.constant dense<0.000000e+00> : vector<8x16x16xf32>
    %55 = tpu.matmul %44, %49, %cst_20 {dimension_numbers = #tpu.dot_dimension_numbers<[2], [2], [1], [1], [0, 0, 0, 1, 1, 1], [0], [0]>} : vector<8x16x8xbf16>, vector<8x16x8xbf16>, vector<8x16x16xf32> -> vector<8x16x16xf32>
    "tpu.trace_stop"() : () -> ()
    %56 = vector.shape_cast %55 : vector<8x16x16xf32> to vector<4x2x16x16xf32>
    %c0_21 = arith.constant 0 : index
    %c0_22 = arith.constant 0 : index
    %c0_23 = arith.constant 0 : index
    %57 = vector.load %arg10[%c0_21, %c0_22, %c0_23] : memref<4x16x16xf32, #tpu.memory_space<vmem>>, vector<4x16x16xf32>
    %58 = vector.shape_cast %57 : vector<4x16x16xf32> to vector<4x1x16x16xf32>
    %59 = vector.broadcast %58 : vector<4x1x16x16xf32> to vector<4x2x16x16xf32>
    %60 = arith.addf %56, %59 : vector<4x2x16x16xf32>
    %c0_24 = arith.constant 0 : index
    %c0_25 = arith.constant 0 : index
    %c0_26 = arith.constant 0 : index
    %61 = vector.load %arg11[%c0_24, %c0_25, %c0_26] : memref<2x16x16xf32, #tpu.memory_space<vmem>>, vector<2x16x16xf32>
    %62 = vector.shape_cast %61 : vector<2x16x16xf32> to vector<1x2x16x16xf32>
    %63 = vector.broadcast %62 : vector<1x2x16x16xf32> to vector<4x2x16x16xf32>
    %64 = arith.addf %60, %63 : vector<4x2x16x16xf32>
    %65 = vector.shape_cast %64 : vector<4x2x16x16xf32> to vector<8x16x16xf32>
    %cst_27 = arith.constant dense<0xFF800000> : vector<8x16xf32>
    %66 = vector.multi_reduction <maximumf>, %65, %cst_27 [2] : vector<8x16x16xf32> to vector<8x16xf32>
    %67 = vector.shape_cast %66 : vector<8x16xf32> to vector<8x16x1xf32>
    %68 = vector.broadcast %67 : vector<8x16x1xf32> to vector<8x16x16xf32>
    %69 = arith.subf %65, %68 : vector<8x16x16xf32>
    %70 = math.exp %69 : vector<8x16x16xf32>
    %cst_28 = arith.constant dense<0.000000e+00> : vector<8x16xf32>
    %71 = vector.multi_reduction <add>, %70, %cst_28 [2] : vector<8x16x16xf32> to vector<8x16xf32>
    %72 = vector.shape_cast %71 : vector<8x16xf32> to vector<8x16x1xf32>
    %73 = tpu.reciprocal %72 {approx = true} : vector<8x16x1xf32> -> vector<8x16x1xf32>
    %74 = vector.broadcast %73 : vector<8x16x1xf32> to vector<8x16x16xf32>
    %75 = arith.mulf %70, %74 : vector<8x16x16xf32>
    %76 = arith.truncf %75 : vector<8x16x16xf32> to vector<8x16x16xbf16>
    "tpu.trace_start"() <{level = 10 : i32, message = "bqk,bkd->bqd"}> : () -> ()
    %cst_29 = arith.constant dense<0.000000e+00> : vector<8x16x8xf32>
    %77 = tpu.matmul %76, %54, %cst_29 {dimension_numbers = #tpu.dot_dimension_numbers<[2], [1], [1], [2], [0, 0, 0, 1, 1, 2], [0], [0]>} : vector<8x16x16xbf16>, vector<8x16x8xbf16>, vector<8x16x8xf32> -> vector<8x16x8xf32>
    "tpu.trace_stop"() : () -> ()
    %78 = vector.extract_strided_slice %77 {offsets = [0, 0, 0], sizes = [2, 16, 8], strides = [1, 1, 1]} : vector<8x16x8xf32> to vector<2x16x8xf32>
    %79 = vector.extract_strided_slice %77 {offsets = [2, 0, 0], sizes = [2, 16, 8], strides = [1, 1, 1]} : vector<8x16x8xf32> to vector<2x16x8xf32>
    %80 = vector.extract_strided_slice %77 {offsets = [4, 0, 0], sizes = [2, 16, 8], strides = [1, 1, 1]} : vector<8x16x8xf32> to vector<2x16x8xf32>
    %81 = vector.extract_strided_slice %77 {offsets = [6, 0, 0], sizes = [2, 16, 8], strides = [1, 1, 1]} : vector<8x16x8xf32> to vector<2x16x8xf32>
    %82 = tpu.concatenate %78, %79, %80, %81 in 2 : vector<2x16x8xf32>, vector<2x16x8xf32>, vector<2x16x8xf32>, vector<2x16x8xf32> -> vector<2x16x32xf32>
    %83 = vector.shape_cast %82 : vector<2x16x32xf32> to vector<32x32xf32>
    %84 = arith.truncf %83 : vector<32x32xf32> to vector<32x32xbf16>
    %c0_30 = arith.constant 0 : index
    %c0_31 = arith.constant 0 : index
    %85 = vector.load %arg8[%c0_30, %c0_31] : memref<32x32xbf16, #tpu.memory_space<vmem>>, vector<32x32xbf16>
    %cst_32 = arith.constant dense<0.000000e+00> : vector<32x32xf32>
    %86 = tpu.matmul %84, %85, %cst_32 {dimension_numbers = #tpu.dot_dimension_numbers<[1], [0], [0], [1], [0, 0, 1, 1], [], []>} : vector<32x32xbf16>, vector<32x32xbf16>, vector<32x32xf32> -> vector<32x32xf32>
    %87 = arith.addf %7, %86 : vector<32x32xf32>
    %c0_33 = arith.constant 0 : index
    %c0_34 = arith.constant 0 : index
    %88 = vector.load %arg9[%c0_33, %c0_34] : memref<1x32xf32, #tpu.memory_space<vmem>>, vector<1x32xf32>
    %89 = vector.broadcast %88 : vector<1x32xf32> to vector<32x32xf32>
    %90 = arith.addf %87, %89 : vector<32x32xf32>
    %91 = vector.shape_cast %90 : vector<32x32xf32> to vector<2x16x32xf32>
    %c0_35 = arith.constant 0 : index
    %c0_36 = arith.constant 0 : index
    %c0_37 = arith.constant 0 : index
    %92 = vector.load %arg12[%c0_35, %c0_36, %c0_37] : memref<2x16x32xf32, #tpu.memory_space<vmem>>, vector<2x16x32xf32>
    tpu.vector_store %arg12[%c0_35, %c0_36, %c0_37], %91 {strides = array<i32>} : memref<2x16x32xf32, #tpu.memory_space<vmem>>, vector<2x16x32xf32>,
    return
  }
  func.func @transform_0(%arg0: i32) -> (i32, i32, i32) {
    %c0_i32 = arith.constant 0 : i32
    %c0_i32_0 = arith.constant 0 : i32
    %c0_i32_1 = arith.constant 0 : i32
    return %arg0, %c0_i32, %c0_i32_0 : i32, i32, i32
  }
  func.func @transform_1(%arg0: i32) -> (i32, i32) {
    %c0_i32 = arith.constant 0 : i32
    %c0_i32_0 = arith.constant 0 : i32
    %c0_i32_1 = arith.constant 0 : i32
    return %c0_i32, %c0_i32_0 : i32, i32
  }
  func.func @transform_2(%arg0: i32) -> (i32, i32) {
    %c0_i32 = arith.constant 0 : i32
    %c0_i32_0 = arith.constant 0 : i32
    %c0_i32_1 = arith.constant 0 : i32
    return %c0_i32, %c0_i32_0 : i32, i32
  }
  func.func @transform_3(%arg0: i32) -> (i32, i32) {
    %c0_i32 = arith.constant 0 : i32
    %c0_i32_0 = arith.constant 0 : i32
    %c0_i32_1 = arith.constant 0 : i32
    return %c0_i32, %c0_i32_0 : i32, i32
  }
  func.func @transform_4(%arg0: i32) -> (i32, i32) {
    %c0_i32 = arith.constant 0 : i32
    %c0_i32_0 = arith.constant 0 : i32
    %c0_i32_1 = arith.constant 0 : i32
    return %c0_i32, %c0_i32_0 : i32, i32
  }
  func.func @transform_5(%arg0: i32) -> (i32, i32) {
    %c0_i32 = arith.constant 0 : i32
    %c0_i32_0 = arith.constant 0 : i32
    %c0_i32_1 = arith.constant 0 : i32
    return %c0_i32, %c0_i32_0 : i32, i32
  }
  func.func @transform_6(%arg0: i32) -> (i32, i32) {
    %c0_i32 = arith.constant 0 : i32
    %c0_i32_0 = arith.constant 0 : i32
    %c0_i32_1 = arith.constant 0 : i32
    return %c0_i32, %c0_i32_0 : i32, i32
  }
  func.func @transform_7(%arg0: i32) -> (i32, i32) {
    %c0_i32 = arith.constant 0 : i32
    %c0_i32_0 = arith.constant 0 : i32
    %c0_i32_1 = arith.constant 0 : i32
    return %c0_i32, %c0_i32_0 : i32, i32
  }
  func.func @transform_8(%arg0: i32) -> (i32, i32) {
    %c0_i32 = arith.constant 0 : i32
    %c0_i32_0 = arith.constant 0 : i32
    %c0_i32_1 = arith.constant 0 : i32
    return %c0_i32, %c0_i32_0 : i32, i32
  }
  func.func @transform_9(%arg0: i32) -> (i32, i32, i32) {
    %c0_i32 = arith.constant 0 : i32
    %c0_i32_0 = arith.constant 0 : i32
    %c0_i32_1 = arith.constant 0 : i32
    %c0_i32_2 = arith.constant 0 : i32
    return %c0_i32, %c0_i32_0, %c0_i32_1 : i32, i32, i32
  }
  func.func @transform_10(%arg0: i32) -> (i32, i32, i32) {
    %c2_i32 = arith.constant 2 : i32
    %c0_i32 = arith.constant 0 : i32
    %0 = arith.cmpi eq, %c2_i32, %c0_i32 : i32
    %c1_i32 = arith.constant 1 : i32
    %1 = arith.select %0, %c1_i32, %c2_i32 : i32
    %2 = arith.remsi %arg0, %1 : i32
    %c0_i32_0 = arith.constant 0 : i32
    %3 = arith.cmpi ne, %2, %c0_i32_0 : i32
    %c0_i32_1 = arith.constant 0 : i32
    %4 = arith.cmpi slt, %2, %c0_i32_1 : i32
    %c0_i32_2 = arith.constant 0 : i32
    %5 = arith.cmpi slt, %1, %c0_i32_2 : i32
    %6 = arith.xori %4, %5 : i1
    %7 = arith.andi %6, %3 : i1
    %8 = arith.addi %2, %1 : i32
    %9 = arith.select %7, %8, %2 : i32
    %c0_i32_3 = arith.constant 0 : i32
    %c0_i32_4 = arith.constant 0 : i32
    %c0_i32_5 = arith.constant 0 : i32
    return %9, %c0_i32_3, %c0_i32_4 : i32, i32, i32
  }
  func.func @transform_11(%arg0: i32) -> (i32, i32, i32) {
    %c0_i32 = arith.constant 0 : i32
    %c0_i32_0 = arith.constant 0 : i32
    %c0_i32_1 = arith.constant 0 : i32
    return %arg0, %c0_i32, %c0_i32_0 : i32, i32, i32
  }
}

</mosaic_0001>

<bundles_post_ra>
// kernel: tpu_custom_call.1
= control target key start
LH: loop header
LB: loop body
LE: loop exit
PB: predicated region body
PF: predicated region fallthrough
CT: control target
= control target key end

     0   :  { %s4149_s0 = inlined_call_operand.hbm [shape: f32[8,16,16], index: 0, kind: input, shape index: {}]   ;;  %s4150_s1 = inlined_call_operand.hbm [shape: bf16[16,32], index: 1, kind: input, shape index: {}]   ;;  %s4151_s2 = inlined_call_operand.hbm [shape: f32[1,32], index: 2, kind: input, shape index: {}]   ;;  %s4152_s3 = inlined_call_operand.hbm [shape: f32[1,32], index: 3, kind: input, shape index: {}]   ;;  %s4153_s4 = inlined_call_operand.hbm [shape: f32[1,32], index: 4, kind: input, shape index: {}]   ;;  %s4154_s5 = inlined_call_operand.hbm [shape: bf16[32,96], index: 5, kind: input, shape index: {}]   ;;  %s4155_s6 = inlined_call_operand.hbm [shape: f32[1,96], index: 6, kind: input, shape index: {}]   ;;  %s4156_s7 = inlined_call_operand.hbm [shape: bf16[32,32], index: 7, kind: input, shape index: {}]   ;;  %s4157_s8 = inlined_call_operand.hbm [shape: f32[1,32], index: 8, kind: input, shape index: {}]   ;;  %s4158_s9 = inlined_call_operand.hbm [shape: f32[4,16,16], index: 9, kind: input, shape index: {}]   ;;  %s4159_s10 = inlined_call_operand.hbm [shape: f32[4,16,16], index: 10, kind: input, shape index: {}]   ;;  %s4160_s11 = inlined_call_operand.hbm [shape: f32[8,16,32], index: 11, kind: output, shape index: {}]  }
   0x1   :  { %4178 = sst [smem:[#allocation33_spill]] %s4149_s0 }
   0x2   :  { %4179 = sst [smem:[#allocation34_spill]] %s4150_s1 }
   0x3   :  { %4180 = sst [smem:[#allocation35_spill]] %s4151_s2 }
   0x4   :  { %4181 = sst [smem:[#allocation36_spill]] %s4152_s3 }
   0x5   :  { %4182 = sst [smem:[#allocation37_spill]] %s4153_s4 }
   0x6   :  { %4183 = sst [smem:[#allocation38_spill]] %s4154_s5 }
   0x7   :  { %4184 = sst [smem:[#allocation39_spill]] %s4155_s6 }
   0x8   :  { %4185 = sst [smem:[#allocation40_spill]] %s4156_s7 }
   0x9   :  { %4186 = sst [smem:[#allocation41_spill]] %s4159_s10 }
   0xa   :  { %4187 = sst [smem:[#allocation42_spill]] %s4160_s11 }
   0xb   :  { %16 = vsyncpa [#allocation3], 0 }
   0xc   :  { %18 = vsyncpa [#allocation3 + $0x1], 0 }
   0xd   :  { %19 = vsyncpa [#allocation6], 0 }
   0xe   :  { %20 = vsyncpa [#allocation9], 0 }
   0xf   :  { %21 = vsyncpa [#allocation12], 0 }
  0x10   :  { %22 = vsyncpa [#allocation15], 0 }
  0x11   :  { %23 = vsyncpa [#allocation18], 0 }
  0x12   :  { %24 = vsyncpa [#allocation4], 0 }
  0x13   :  { %26 = vsyncpa [#allocation4 + $0x1], 0  ;;  %s3260_s17 = smov 0   ;;  %s3262_s18 = smov 0  }
  0x14   :  { %s3264_s19 = smov 0   ;;  %s3266_s20 = smov 0  }
  0x15   :  { %s3268_s21 = smov 0   ;;  %s3270_s22 = smov 0  }
  0x16   :  { %s3272_s23 = smov 0  }
  0x17 LB: > { %4188 = sst [smem:[#allocation29_spill]] %s3147_s17  ;;  %s3173_s24 = smov [#allocation5]   ;;  %s3171_s23 = sphi %s3272_s23, %s4244_s23   ;;  %s3167_s22 = sphi %s3270_s22, %s4243_s22   ;;  %s3163_s21 = sphi %s3268_s21, %s4242_s21   ;;  %s3159_s20 = sphi %s3266_s20, %s4241_s20   ;;  %s3155_s19 = sphi %s3264_s19, %s4240_s19   ;;  %s3151_s18 = sphi %s3262_s18, %s4239_s18   ;;  %s3147_s17 = sphi %s3260_s17, %s4238_s17  }
  0x18   : > { %4189 = sst [smem:[#allocation30_spill]] %s3151_s18  ;;  %s340_s25 = sshll.u32 %s3173_s24, 4  ;;  %s3301_s25 = int_to_ptr.vmem [resolvable:$true] %s340_s25 }
  0x19   : > { %4190 = sst [smem:[#allocation31_spill]] %s3155_s19  ;;  %s3296_s26 = sadd.s32 4294967295, %s3171_s23  }
  0x1a   : > { %p2217_p0 = scmp.ge.s32.totalorder %s3171_s23, 1  ;;  %p4166_p1 = scmp.eq.s32.totalorder %s3296_s26, 0 }
  0x1b   : > { %p328_p2 = scmp.lt.s32.totalorder %s3171_s23, 5  ;;  %s3174_s28 = smov [#allocation8]  }
  0x1c   : > { %s365_s29 = sshll.u32 %s3174_s28, 4  ;;  %s3175_s12 = smov [#allocation11]   ;;  %s3315_s29 = int_to_ptr.vmem [resolvable:$true] %s365_s29 }
  0x1d   : > { %p3303_p3 = pnand %p2217_p0, %p328_p2  ;;  %s386_s13 = sshll.u32 %s3175_s12, 4  ;;  %s3317_s13 = int_to_ptr.vmem [resolvable:$true] %s386_s13 }
  0x1e   : > { %s4194_s1 = sld [smem:[#allocation34_spill]] }
  0x1f   : > { %s4191_s27 = scalar_select %p3303_p3, 1, 0 }
  0x20   : > { %p2499_p4 = pneg %p3303_p3 }
  0x21   : > { %4192 = sst [smem:[#allocation32_spill]] %s4191_s27 }
  0x22   : > { %p3311_p5 = pnand %p2499_p4, %p4166_p1 }
  0x24   : > { %s4193_s30 = scalar_select %p3311_p5, 1, 0 }
  0x25   : > { %s2745_s16 = scalar_lea.hbm %s4194_s1, 128  ;;  %p3327_p7 = pneg %p3311_p5 }
  0x26   : > { %p2746_p6 = scmp.ne.s32.totalorder %s4194_s1, %s2745_s16  ;;  %p2752_p10 = scmp.lt.u32.totalorder %s2745_s16, %s4194_s1 }
  0x28   : > { %p2748_p8 = pnand %p3327_p7, %p2746_p6 }
  0x2a   : > { %p2749_p9 = pneg %p2748_p8 }
  0x2c   : > { %p2754_p11 = pnand %p2752_p10, %p2749_p9 }
  0x2e   : > { %2757 = shalt.err (!%p2754_p11)
}
  0x2f   : > { %s2758_s11 = scalar_lea.vmem %s3301_s25, 128  ;;  %p2766_p2 = scmp.lt.s32.totalorder %s3301_s25, %s3301_s25 }
  0x30   : > { %p2759_p12 = scmp.ne.s32.totalorder %s3301_s25, %s2758_s11  ;;  %p2767_p4 = scmp.lt.s32.totalorder %s2758_s11, %s2758_s11 }
  0x32   : > { %p2761_p13 = pnand %p2759_p12, %p3327_p7  ;;  %p2768_p6 = por %p2767_p4, %p2766_p2 }
  0x34   : > { %p2762_p0 = pneg %p2761_p13 }
  0x36   : > { %p2769_p8 = pnand %p2768_p6, %p2762_p0 }
  0x38   : > { %2772 = shalt.err (!%p2769_p8)
}
  0x39   : > { %s3176_s14 = smov 64   ;;  %s3177_s27 = smov 4  }
  0x3a   : > { %2502 = dma.hbm_to_vmem [thread:$0]  (!%p3311_p5), %s4194_s1, 128, %s3301_s25, [#allocation6], %s3176_s14, %s3176_s14, %s3177_s27  }
  0x3b   : > { %s4196_s3 = sld [smem:[#allocation36_spill]] }
  0x41   : > { %s2773_s11 = scalar_lea.hbm %s4196_s3, 16 }
  0x42   : > { %p2774_p9 = scmp.ne.s32.totalorder %s4196_s3, %s2773_s11  ;;  %p2780_p12 = scmp.lt.u32.totalorder %s2773_s11, %s4196_s3 }
  0x44   : > { %p2776_p10 = pnand %p2774_p9, %p3327_p7 }
  0x46   : > { %p2777_p11 = pneg %p2776_p10 }
  0x48   : > { %p2782_p13 = pnand %p2780_p12, %p2777_p11 }
  0x4a   : > { %2785 = shalt.err (!%p2782_p13)
}
  0x4b   : > { %s2786_s25 = scalar_lea.vmem %s3315_s29, 16  ;;  %s2793_s10 = scalar_lea.vmem %s3315_s29, 32 }
  0x4c   : > { %p2787_p0 = scmp.ne.s32.totalorder %s3315_s29, %s2786_s25  ;;  %p2794_p6 = scmp.lt.s32.totalorder %s3315_s29, %s3315_s29 }
  0x4d   : > { %p2795_p8 = scmp.lt.s32.totalorder %s2793_s10, %s2786_s25 }
  0x4e   : > { %p2789_p2 = pnand %p2787_p0, %p3327_p7 }
  0x4f   : > { %p2796_p9 = por %p2795_p8, %p2794_p6 }
  0x50   : > { %p2790_p4 = pneg %p2789_p2 }
  0x52   : > { %p2797_p10 = pnand %p2796_p9, %p2790_p4 }
  0x54   : > { %2800 = shalt.err (!%p2797_p10)
}
  0x55   : > { %2508 = dma.hbm_to_vmem [thread:$0]  (!%p3311_p5), %s4196_s3, 16, %s3315_s29, [#allocation9]  }
  0x56   : > { %s4197_s5 = sld [smem:[#allocation38_spill]] }
  0x5c   : > { %s2801_s16 = scalar_lea.hbm %s4197_s5, 256 }
  0x5d   : > { %p2802_p11 = scmp.ne.s32.totalorder %s4197_s5, %s2801_s16  ;;  %p2808_p0 = scmp.lt.u32.totalorder %s2801_s16, %s4197_s5 }
  0x5f   : > { %p2804_p12 = pnand %p2802_p11, %p3327_p7 }
  0x61   : > { %p2805_p13 = pneg %p2804_p12 }
  0x63   : > { %p2810_p2 = pnand %p2808_p0, %p2805_p13 }
  0x65   : > { %2813 = shalt.err (!%p2810_p2)
}
  0x66   : > { %s2814_s29 = scalar_lea.vmem %s3317_s13, 256  ;;  %p2822_p9 = scmp.lt.s32.totalorder %s3317_s13, %s3317_s13 }
  0x67   : > { %p2815_p4 = scmp.ne.s32.totalorder %s3317_s13, %s2814_s29  ;;  %p2823_p10 = scmp.lt.s32.totalorder %s2814_s29, %s2814_s29 }
  0x69   : > { %p2817_p6 = pnand %p2815_p4, %p3327_p7  ;;  %p2824_p11 = por %p2823_p10, %p2822_p9 }
  0x6b   : > { %p2818_p8 = pneg %p2817_p6 }
  0x6d   : > { %p2825_p12 = pnand %p2824_p11, %p2818_p8 }
  0x6f   : > { %2828 = shalt.err (!%p2825_p12)
}
  0x70   : > { %2514 = dma.hbm_to_vmem [thread:$0]  (!%p3311_p5), %s4197_s5, 256, %s3317_s13, [#allocation12], %s3176_s14, %s3176_s14, %s3177_s27  }
  0x71   : > { %s3178_s18 = smov [#allocation14]   ;;  %s4198_s7 = sld [smem:[#allocation40_spill]] }
  0x72   : > { %s410_s19 = sshll.u32 %s3178_s18, 4  ;;  %s411_s19 = int_to_ptr.vmem [resolvable:$true] %s410_s19 }
  0x77   : > { %s2829_s24 = scalar_lea.hbm %s4198_s7, 256 }
  0x78   : > { %p2830_p13 = scmp.ne.s32.totalorder %s4198_s7, %s2829_s24  ;;  %p2836_p4 = scmp.lt.u32.totalorder %s2829_s24, %s4198_s7 }
  0x7a   : > { %p2832_p0 = pnand %p2830_p13, %p3327_p7 }
  0x7c   : > { %p2833_p2 = pneg %p2832_p0 }
  0x7e   : > { %p2838_p6 = pnand %p2836_p4, %p2833_p2 }
  0x80   : > { %2841 = shalt.err (!%p2838_p6)
}
  0x81   : > { %s2842_s13 = scalar_lea.vmem %s411_s19, 256  ;;  %p2850_p11 = scmp.lt.s32.totalorder %s411_s19, %s411_s19 }
  0x82   : > { %p2843_p8 = scmp.ne.s32.totalorder %s411_s19, %s2842_s13  ;;  %p2851_p12 = scmp.lt.s32.totalorder %s2842_s13, %s2842_s13 }
  0x84   : > { %p2845_p9 = pnand %p2843_p8, %p3327_p7  ;;  %p2852_p1 = por %p2851_p12, %p2850_p11 }
  0x86   : > { %p2846_p10 = pneg %p2845_p9 }
  0x88   : > { %p2853_p3 = pnand %p2852_p1, %p2846_p10 }
  0x8a   : > { %2856 = shalt.err (!%p2853_p3)
}
  0x8b   : > { %2520 = dma.hbm_to_vmem [thread:$0]  (!%p3311_p5), %s4198_s7, 256, %s411_s19, [#allocation15], %s3176_s14, %s3176_s14, %s3177_s27  }
  0x8c   : > { %s2210_s18 = sadd.s32 4294967294, %s3171_s23   ;;  %s3424_s15 = sadd.s32 1, %s3171_s23  }
  0x8d   : > { %s36_s16 = ssub.s32 %s3171_s23, %s3424_s15  ;;  %s39_s24 = sadd.s32 1, %s3167_s22 }
  0x8e   : > { %p37_p1 = scmp.eq.s32.totalorder %s36_s16, 0  ;;  %p46_p3 = scmp.ne.s32.totalorder %s3167_s22, %s3163_s21 }
  0x8f   : > { %p4169_p13 = scmp.eq.s32.totalorder %s3171_s23, 0  ;;  %p52_p0 = scmp.ne.s32.totalorder %s3163_s21, %s3159_s20 }
  0x90   : > { %s3435_s12 = scalar_select %p37_p1, %s3167_s22, %s39_s24  }
  0x91   : > { %p3439_p2 = por %p4169_p13, %p46_p3  ;;  %p4200_p4 = scmp.eq.s32.totalorder %s3296_s26, 0 }
  0x92   : > { %p315_p8 = scmp.eq.s32.totalorder %s3296_s26, 3  ;;  %p321_p9 = scmp.eq.s32.totalorder %s2210_s18, 3 }
  0x93   : > { %p3445_p6 = por %p4200_p4, %p52_p0  ;;  %p4168_p12 = scmp.lt.s32.totalorder %s3171_s23, 4 }
  0x94   : > { %p3450_p10 = por %p315_p8, %p46_p3  ;;  %p3454_p11 = por %p321_p9, %p52_p0 }
  0x95   : > { %s4201_s27 = scalar_select %p3445_p6, 1, 0 }
  0x96   : > { %s4202_s19 = scalar_select %p3450_p10, 1, 0 }
  0x97   : > { %s4203_s11 = scalar_select %p3454_p11, 1, 0 }
  0x98   : > { %s448_s25 = sand.u32 1, %s3171_s23   ;;  %s450_s29 = sand.u32 1, %s3167_s22  }
  0x99   : > { %s2228_s13 = sshll.u32 %s450_s29, 5  ;;  %s2291_s10 = sshll.u32 %s3171_s23, 9 }
  0x9a   : > { %s4204_s0 = sld [smem:[#allocation33_spill]]  ;;  %s452_s18 = scalar_lea.vmem [#allocation2], %s2228_s13 }
  0x9b   : > { %s460_s1 = sshll.u32 %s452_s18, 4  ;;  %p3471_p1 = pnand %p4168_p12, %p3439_p2  ;;  %s3475_s1 = int_to_ptr.vmem [resolvable:$true] %s460_s1 }
  0x9c   : > { %s3179_s29 = smov [#allocation7]  }
  0x9d   : > { %s3477_s17 = sshll.u32 %s3179_s29, 4  ;;  %p2859_p0 = pneg %p3471_p1  ;;  %s355_s17 = int_to_ptr.vmem [resolvable:$true] %s3477_s17 }
  0xa0   : > { %s3465_s24 = scalar_lea.hbm %s4204_s0, %s2291_s10  ;;  %s3479_s10 = scalar_lea.sflag [#allocation3], %s448_s25 }
  0xa1   : > { %s2857_s16 = scalar_lea.hbm %s3465_s24, 512  ;;  %s2862_s18 = scalar_lea.hbm %s4204_s0, 2048 }
  0xa2   : > { %p2858_p3 = scmp.ne.s32.totalorder %s3465_s24, %s2857_s16  ;;  %p2863_p8 = scmp.lt.u32.totalorder %s3465_s24, %s4204_s0 }
  0xa3   : > { %p2864_p9 = scmp.lt.u32.totalorder %s2862_s18, %s2857_s16  ;;  %p2866_p13 = scmp.lt.u32.totalorder %s2857_s16, %s3465_s24 }
  0xa4   : > { %p2860_p4 = pnand %p2859_p0, %p2858_p3 }
  0xa5   : > { %p2865_p12 = por %p2864_p9, %p2863_p8 }
  0xa6   : > { %p2861_p2 = pneg %p2860_p4 }
  0xa7   : > { %p2867_p11 = por %p2866_p13, %p2865_p12 }
  0xa9   : > { %p2868_p10 = pnand %p2867_p11, %p2861_p2 }
  0xab   : > { %2871 = shalt.err (!%p2868_p10)
}
  0xac   : > { %s2872_s25 = scalar_lea.vmem %s3475_s1, 512  ;;  %s3180_s29 = smov [#allocation2]  }
  0xad   : > { %p2873_p3 = scmp.ne.s32.totalorder %s3475_s1, %s2872_s25  ;;  %s2877_s14 = sshll.u32 %s3180_s29, 4  ;;  %s2878_s14 = int_to_ptr.vmem [resolvable:$false] %s2877_s14 }
  0xae   : > { %s2879_s5 = scalar_lea.vmem %s2878_s14, 1024  ;;  %p2880_p5 = scmp.lt.s32.totalorder %s3475_s1, %s2878_s14 }
  0xaf   : > { %p2875_p4 = pnand %p2873_p3, %p2859_p0  ;;  %p2881_p8 = scmp.lt.s32.totalorder %s2879_s5, %s2872_s25 }
  0xb1   : > { %p2876_p6 = pneg %p2875_p4  ;;  %p2882_p9 = por %p2881_p8, %p2880_p5 }
  0xb3   : > { %p2883_p13 = pnand %p2882_p9, %p2876_p6 }
  0xb5   : > { %2886 = shalt.err (!%p2883_p13)
}
  0xb6   : > { %s4174_s7 = smov 128   ;;  %s4176_s16 = smov 8  }
  0xb7   : > { %2530 = dma.hbm_to_vmem [thread:$0]  (!%p3471_p1), %s3465_s24, 512, %s3475_s1, %s3479_s10, %s4174_s7, %s4174_s7, %s4176_s16  }
  0xb8   : > { %s4206_s2 = sld [smem:[#allocation35_spill]] }
  0xbe   : > { %s2887_s25 = scalar_lea.hbm %s4206_s2, 16 }
  0xbf   : > { %p2888_p5 = scmp.ne.s32.totalorder %s4206_s2, %s2887_s25  ;;  %p2894_p11 = scmp.lt.u32.totalorder %s2887_s25, %s4206_s2 }
  0xc1   : > { %p2890_p6 = pnand %p2888_p5, %p3327_p7 }
  0xc3   : > { %p2891_p10 = pneg %p2890_p6 }
  0xc5   : > { %p2896_p12 = pnand %p2894_p11, %p2891_p10 }
  0xc7   : > { %2899 = shalt.err (!%p2896_p12)
}
  0xc8   : > { %s2900_s3 = scalar_lea.vmem %s355_s17, 16  ;;  %s2907_s1 = scalar_lea.vmem %s355_s17, 32 }
  0xc9   : > { %p2901_p1 = scmp.ne.s32.totalorder %s355_s17, %s2900_s3  ;;  %p2908_p3 = scmp.lt.s32.totalorder %s355_s17, %s355_s17 }
  0xca   : > { %p2909_p4 = scmp.lt.s32.totalorder %s2907_s1, %s2900_s3 }
  0xcb   : > { %p2903_p0 = pnand %p2901_p1, %p3327_p7 }
  0xcc   : > { %p2910_p8 = por %p2909_p4, %p2908_p3 }
  0xcd   : > { %p2904_p2 = pneg %p2903_p0 }
  0xcf   : > { %p2911_p9 = pnand %p2910_p8, %p2904_p2 }
  0xd1   : > { %2914 = shalt.err (!%p2911_p9)
}
  0xd2   : > { %p4207_p13 = scmp.ne.s32.totalorder %s4193_s30, 0  ;;  %s3183_s0 = smov [#allocation10]  }
  0xd3   : > { %s376_s18 = sshll.u32 %s3183_s0, 4  ;;  %s3184_s25 = smov [#allocation13]   ;;  %s377_s18 = int_to_ptr.vmem [resolvable:$true] %s376_s18 }
  0xd4   : > { %2505 = dma.hbm_to_vmem [thread:$0]  (!%p4207_p13), %s4206_s2, 16, %s355_s17, [#allocation6]  }
  0xd5   : > { %s400_s29 = sshll.u32 %s3184_s25, 4  ;;  %s4208_s4 = sld [smem:[#allocation37_spill]]  ;;  %s401_s29 = int_to_ptr.vmem [resolvable:$true] %s400_s29 }
  0xdb   : > { %s2915_s7 = scalar_lea.hbm %s4208_s4, 16 }
  0xdc   : > { %p2916_p5 = scmp.ne.s32.totalorder %s4208_s4, %s2915_s7  ;;  %p2922_p11 = scmp.lt.u32.totalorder %s2915_s7, %s4208_s4 }
  0xde   : > { %p2918_p6 = pnand %p2916_p5, %p3327_p7 }
  0xe0   : > { %p2919_p10 = pneg %p2918_p6 }
  0xe2   : > { %p2924_p12 = pnand %p2922_p11, %p2919_p10 }
  0xe4   : > { %2927 = shalt.err (!%p2924_p12)
}
  0xe5   : > { %s2928_s17 = scalar_lea.vmem %s377_s18, 16  ;;  %s2935_s13 = scalar_lea.vmem %s377_s18, 32 }
  0xe6   : > { %p2929_p1 = scmp.ne.s32.totalorder %s377_s18, %s2928_s17  ;;  %p2936_p3 = scmp.lt.s32.totalorder %s377_s18, %s377_s18 }
  0xe7   : > { %p2937_p4 = scmp.lt.s32.totalorder %s2935_s13, %s2928_s17 }
  0xe8   : > { %p2931_p0 = pnand %p2929_p1, %p3327_p7 }
  0xe9   : > { %p2938_p8 = por %p2937_p4, %p2936_p3 }
  0xea   : > { %p2932_p2 = pneg %p2931_p0 }
  0xec   : > { %p2939_p9 = pnand %p2938_p8, %p2932_p2 }
  0xee   : > { %2942 = shalt.err (!%p2939_p9)
}
  0xef   : > { %2511 = dma.hbm_to_vmem [thread:$0]  (!%p4207_p13), %s4208_s4, 16, %s377_s18, [#allocation9]  }
  0xf0   : > { %s4209_s6 = sld [smem:[#allocation39_spill]] }
  0xf6   : > { %s2943_s14 = scalar_lea.hbm %s4209_s6, 16 }
  0xf7   : > { %p2944_p5 = scmp.ne.s32.totalorder %s4209_s6, %s2943_s14  ;;  %p2950_p11 = scmp.lt.u32.totalorder %s2943_s14, %s4209_s6 }
  0xf9   : > { %p2946_p6 = pnand %p2944_p5, %p3327_p7 }
  0xfb   : > { %p2947_p10 = pneg %p2946_p6 }
  0xfd   : > { %p2952_p12 = pnand %p2950_p11, %p2947_p10 }
  0xff   : > { %2955 = shalt.err (!%p2952_p12)
}
 0x100   : > { %s2956_s17 = scalar_lea.vmem %s401_s29, 16  ;;  %s2963_s18 = scalar_lea.vmem %s401_s29, 32 }
 0x101   : > { %p2957_p1 = scmp.ne.s32.totalorder %s401_s29, %s2956_s17  ;;  %p2964_p3 = scmp.lt.s32.totalorder %s401_s29, %s401_s29 }
 0x102   : > { %p2965_p4 = scmp.lt.s32.totalorder %s2963_s18, %s2956_s17 }
 0x103   : > { %p2959_p0 = pnand %p2957_p1, %p3327_p7 }
 0x104   : > { %p2966_p8 = por %p2965_p4, %p2964_p3 }
 0x105   : > { %p2960_p2 = pneg %p2959_p0 }
 0x107   : > { %p2967_p9 = pnand %p2966_p8, %p2960_p2 }
 0x109   : > { %2970 = shalt.err (!%p2967_p9)
}
 0x10a   : > { %2517 = dma.hbm_to_vmem [thread:$0]  (!%p4207_p13), %s4209_s6, 16, %s401_s29, [#allocation12]  }
 0x10b   : > { %s3185_s25 = smov [#allocation16]   ;;  %s3186_s16 = smov [#allocation17]  }
 0x10c   : > { %s424_s7 = sshll.u32 %s3185_s25, 4  ;;  %s434_s14 = sshll.u32 %s3186_s16, 4  ;;  %s425_s7 = int_to_ptr.vmem [resolvable:$true] %s424_s7  ;;  %s435_s14 = int_to_ptr.vmem [resolvable:$true] %s434_s14 }
 0x10d   : > { %s2971_s1 = scalar_lea.hbm %s4157_s8, 16 }
 0x10e   : > { %p2972_p5 = scmp.ne.s32.totalorder %s4157_s8, %s2971_s1  ;;  %p2978_p11 = scmp.lt.u32.totalorder %s2971_s1, %s4157_s8 }
 0x110   : > { %p2974_p6 = pnand %p2972_p5, %p3327_p7 }
 0x112   : > { %p2975_p10 = pneg %p2974_p6 }
 0x114   : > { %p2980_p12 = pnand %p2978_p11, %p2975_p10 }
 0x116   : > { %2983 = shalt.err (!%p2980_p12)
}
 0x117   : > { %s2984_s29 = scalar_lea.vmem %s425_s7, 16  ;;  %s2991_s0 = scalar_lea.vmem %s425_s7, 32 }
 0x118   : > { %p2985_p1 = scmp.ne.s32.totalorder %s425_s7, %s2984_s29  ;;  %p2992_p3 = scmp.lt.s32.totalorder %s425_s7, %s425_s7 }
 0x119   : > { %p2993_p4 = scmp.lt.s32.totalorder %s2991_s0, %s2984_s29 }
 0x11a   : > { %p2987_p0 = pnand %p2985_p1, %p3327_p7 }
 0x11b   : > { %p2994_p8 = por %p2993_p4, %p2992_p3 }
 0x11c   : > { %p2988_p2 = pneg %p2987_p0 }
 0x11e   : > { %p2995_p9 = pnand %p2994_p8, %p2988_p2 }
 0x120   : > { %2998 = shalt.err (!%p2995_p9)
}
 0x121   : > { %2523 = dma.hbm_to_vmem [thread:$0]  (!%p4207_p13), %s4157_s8, 16, %s425_s7, [#allocation15]  }
 0x122   : > { %s2999_s1 = scalar_lea.hbm %s4158_s9, 1024 }
 0x123   : > { %p3000_p5 = scmp.ne.s32.totalorder %s4158_s9, %s2999_s1  ;;  %p3006_p11 = scmp.lt.u32.totalorder %s2999_s1, %s4158_s9 }
 0x125   : > { %p3002_p6 = pnand %p3000_p5, %p3327_p7 }
 0x127   : > { %p3003_p10 = pneg %p3002_p6 }
 0x129   : > { %p3008_p12 = pnand %p3006_p11, %p3003_p10 }
 0x12b   : > { %3011 = shalt.err (!%p3008_p12)
}
 0x12c   : > { %s3012_s29 = scalar_lea.vmem %s435_s14, 1024  ;;  %p3020_p3 = scmp.lt.s32.totalorder %s435_s14, %s435_s14 }
 0x12d   : > { %p3013_p1 = scmp.ne.s32.totalorder %s435_s14, %s3012_s29  ;;  %p3021_p4 = scmp.lt.s32.totalorder %s3012_s29, %s3012_s29 }
 0x12f   : > { %p3015_p0 = pnand %p3013_p1, %p3327_p7  ;;  %p3022_p8 = por %p3021_p4, %p3020_p3 }
 0x131   : > { %p3016_p2 = pneg %p3015_p0 }
 0x133   : > { %p3023_p9 = pnand %p3022_p8, %p3016_p2 }
 0x135   : > { %3026 = shalt.err (!%p3023_p9)
}
 0x136   : > { %s4210_s7 = smov 8   ;;  %s4211_s0 = smov 128  }
 0x137   : > { %s4212_s28 = sld [smem:[#allocation31_spill]]  ;;  %p251_p7 = scmp.lt.s32.totalorder %s3171_s23, 0 }
 0x138   : > { %2526 = dma.hbm_to_vmem [thread:$0]  (!%p4207_p13), %s4158_s9, 1024, %s435_s14, [#allocation18], %s4211_s0, %s4211_s0, %s4210_s7  }
 0x139   : > { %s252_s5 = ssub.s32 0, %s3171_s23  ;;  %p263_p5 = scmp.lt.s32.totalorder %s3424_s15, 0 }
 0x13a   : > { %s4213_s3 = sld [smem:[#allocation30_spill]]  ;;  %s2211_s30 = smin.u32 %s3171_s23, %s252_s5 }
 0x13b   : > { %s4214_s1 = sld [smem:[#allocation29_spill]]  ;;  %s264_s24 = ssub.s32 0, %s3424_s15 }
 0x13c   : > { %s254_s17 = sand.u32 1, %s2211_s30   ;;  %s2214_s18 = smin.u32 %s264_s24, %s3424_s15 }
 0x13d   : > { %s255_s13 = ssub.s32 0, %s254_s17  ;;  %s266_s29 = sand.u32 1, %s2214_s18  }
 0x13e   : > { %s4246_s13 = smov (!%p251_p7, %s255_s13), %s254_s17  ;;  %s267_s25 = ssub.s32 0, %s266_s29 }
 0x13f   : > { %s278_s16 = sadd.s32 1, %s4212_s28  ;;  %p2213_p13 = scmp.lt.s32.totalorder %s4246_s13, 0 }
 0x140   : > { %s261_s14 = sadd.s32 2, %s4246_s13  ;;  %s4248_s25 = smov (!%p263_p5, %s267_s25), %s266_s29 }
 0x141   : > { %s4250_s14 = smov (!%p2213_p13, %s261_s14), %s4246_s13  ;;  %p2216_p6 = scmp.lt.s32.totalorder %s4248_s25, 0 }
 0x142   : > { %s273_s5 = sadd.s32 2, %s4248_s25  ;;  %p285_p10 = scmp.ne.s32.totalorder %s4212_s28, %s4213_s3 }
 0x143   : > { %p291_p11 = scmp.ne.s32.totalorder %s4213_s3, %s4214_s1  ;;  %s4252_s5 = smov (!%p2216_p6, %s273_s5), %s4248_s25 }
 0x144   : > { %p4215_p12 = scmp.eq.s32.totalorder %s3171_s23, 0  ;;  %p4216_p0 = scmp.eq.s32.totalorder %s3296_s26, 0 }
 0x145   : > { %s275_s24 = ssub.s32 %s4250_s14, %s4252_s5  ;;  %s472_s17 = sand.u32 1, %s4212_s28  }
 0x146   : > { %p287_p1 = por %p285_p10, %p4215_p12  ;;  %p3619_p2 = por %p291_p11, %p4216_p0 }
 0x147   : > { %p276_p3 = scmp.eq.s32.totalorder %s275_s24, 0  ;;  %s2232_s18 = sshll.u32 %s472_s17, 5 }
 0x148   : > { %s2293_s2 = sshll.u32 %s4250_s14, 9  ;;  %s4218_s4 = sld [smem:[#allocation41_spill]] }
 0x149   : > { %s4254_s28 = smov (!%p276_p3, %s4212_s28), %s278_s16  ;;  %s474_s3 = scalar_lea.vmem [#allocation19], %s2232_s18 }
 0x14a   : > { %s494_s1 = sshll.u32 %s474_s3, 4  ;;  %p4219_p4 = scmp.lt.s32.totalorder %s3171_s23, 4  ;;  %s3632_s1 = int_to_ptr.vmem [resolvable:$true] %s494_s1 }
 0x14c   : > { %p3636_p8 = pnand %p4219_p4, %p287_p1 }
 0x14e   : > { %s3630_s6 = scalar_lea.hbm %s4218_s4, %s2293_s2  ;;  %p3029_p7 = pneg %p3636_p8 }
 0x14f   : > { %s3027_s16 = scalar_lea.hbm %s3630_s6, 512  ;;  %s3032_s5 = scalar_lea.hbm %s4218_s4, 1024 }
 0x150   : > { %p3028_p9 = scmp.ne.s32.totalorder %s3630_s6, %s3027_s16  ;;  %p3033_p6 = scmp.lt.u32.totalorder %s3630_s6, %s4218_s4 }
 0x151   : > { %p3034_p10 = scmp.lt.u32.totalorder %s3032_s5, %s3027_s16  ;;  %p3036_p12 = scmp.lt.u32.totalorder %s3027_s16, %s3630_s6 }
 0x152   : > { %p3030_p5 = pnand %p3029_p7, %p3028_p9 }
 0x153   : > { %p3035_p11 = por %p3034_p10, %p3033_p6 }
 0x154   : > { %p3031_p13 = pneg %p3030_p5 }
 0x155   : > { %p3037_p1 = por %p3036_p12, %p3035_p11 }
 0x157   : > { %p3038_p0 = pnand %p3037_p1, %p3031_p13 }
 0x159   : > { %3041 = shalt.err (!%p3038_p0)
}
 0x15a   : > { %s3042_s18 = scalar_lea.vmem %s3632_s1, 512  ;;  %s3187_s13 = smov [#allocation19]  }
 0x15b   : > { %p3043_p3 = scmp.ne.s32.totalorder %s3632_s1, %s3042_s18  ;;  %s3047_s29 = sshll.u32 %s3187_s13, 4  ;;  %s3048_s29 = int_to_ptr.vmem [resolvable:$false] %s3047_s29 }
 0x15c   : > { %s3049_s3 = scalar_lea.vmem %s3048_s29, 1024  ;;  %p3050_p5 = scmp.lt.s32.totalorder %s3632_s1, %s3048_s29 }
 0x15d   : > { %p3045_p4 = pnand %p3043_p3, %p3029_p7  ;;  %p3051_p6 = scmp.lt.s32.totalorder %s3049_s3, %s3042_s18 }
 0x15f   : > { %p3046_p9 = pneg %p3045_p4  ;;  %p3052_p10 = por %p3051_p6, %p3050_p5 }
 0x161   : > { %p3053_p11 = pnand %p3052_p10, %p3046_p9 }
 0x163   : > { %3056 = shalt.err (!%p3053_p11)
}
 0x164   : > { %2533 = dma.hbm_to_vmem [thread:$0]  (!%p3636_p8), %s3630_s6, 512, %s3632_s1, %s3479_s10, %s4211_s0, %s4211_s0, %s4210_s7  }
 0x165   : > { %s4221_s16 = sld [smem:[#allocation32_spill]] }
 0x16b   : > { %p4222_p7 = scmp.ne.s32.totalorder %s4221_s16, 0 }
 0x16c   : > { %s508_s2 = sand.u32 (!%p4222_p7), 1, %s3296_s26   ;;  %s510_s14 = sand.u32 (!%p4222_p7), 1, %s3163_s21  }
 0x16d   : > { %506 = sbr.rel (%p4222_p7) target bundleno = 2580 (0xa14), region = 64  ;;  %s3675_s5 = sshll.u32 (!%p4222_p7), %s510_s14, 5 }
 0x16e   : > { %s509_s25 = scalar_lea.sflag (!%p4222_p7), [#allocation3], %s508_s2  ;;  %s512_s24 = scalar_lea.vmem (!%p4222_p7), [#allocation2], %s3675_s5 }
 0x16f   : > { %p4223_p13 = scmp.ne.s32.totalorder (!%p4222_p7), %s4201_s27, 0 }
 0x174   : > { %3114 = dma.done.wait (%p4223_p13), %s509_s25, 512  }
 0x175   : > { %3116 = vsyncadd (%p4223_p13), %s509_s25, 4294966784  ;;  %p4224_p8 = scmp.eq.s32.totalorder %s3296_s26, 0 }
 0x177   : > { %3118 = dma.done.wait (%p4224_p8), [#allocation6], 144   ;;  %p4225_p12 = pmov %p4224_p8 }
 0x178   : > { %p4226_p1 = pmov %p4224_p8 }
 0x179   : > { %3120 = vsyncadd (%p4225_p12), [#allocation6], 4294967152 }
 0x17a   : > { %3122 = dma.done.wait (%p4226_p1), [#allocation9], 32   ;;  %p4227_p0 = pmov %p4226_p1 }
 0x17c   : > { %3124 = vsyncadd (%p4227_p0), [#allocation9], 4294967264  ;;  %p4228_p3 = pmov %p4227_p0 }
 0x17d   : > { %p4229_p4 = pmov %p4227_p0 }
 0x17e   : > { %3126 = dma.done.wait (%p4228_p3), [#allocation12], 272  }
 0x17f   : > { %3128 = vsyncadd (%p4229_p4), [#allocation12], 4294967024  ;;  %p4230_p9 = pmov %p4227_p0 }
 0x180   : > { %p4231_p5 = pmov %p4227_p0 }
 0x181   : > { %3130 = dma.done.wait (%p4230_p9), [#allocation15], 272  }
 0x182   : > { %3132 = vsyncadd (%p4231_p5), [#allocation15], 4294967024  ;;  %p4232_p6 = pmov %p4227_p0 }
 0x183   : > { %p4233_p10 = pmov %p4227_p0 }
 0x184   : > { %3134 = dma.done.wait (%p4232_p6), [#allocation18], 1024  }
 0x185   : > { %3136 = vsyncadd (%p4233_p10), [#allocation18], 4294966272  ;;  %s4234_s6 = sld [smem:[#allocation30_spill]] }
 0x18b   : > { %s555_s27 = sand.u32 1, %s4234_s6  }
 0x18c   : > { %s2250_s10 = sshll.u32 %s555_s27, 5 }
 0x18d   : > { %s3703_s7 = scalar_lea.vmem [#allocation19], %s2250_s10 }
 0x18e   : > { %3138 = dma.done.wait (%p3619_p2), %s509_s25, 512  }
 0x18f   : > { %3140 = vsyncadd (%p3619_p2), %s509_s25, 4294966784  ;;  %v2668_v0 = vld [vmem:[#allocation5] sm:$0xff]   ;;  %v618_v2 = vld [vmem:[%s512_s24 + $0x8] sm:$0xff]  ;;  %vm638_vm0 = vcmask 130048   ;;  %vm694_vm1 = vcmask 261120   ;;  %s3189_s0 = smov 120  }
 0x190   : > { %v617_v1 = vld [vmem:[%s512_s24] sm:$0xff]  ;;  %v619_v3 = vld [vmem:[%s512_s24 + $0x10] sm:$0xff]  ;;  %2339 = vmatprep.subr.bf16.mxu0 %v2668_v0  ;;  %v620_v5 = vld [vmem:[%s512_s24 + $0x18] sm:$0xff]  ;;  %s3190_s30 = smov 112   ;;  %vm3191_vm2 = vmmov 0   ;;  %s3192_s1 = smov 104  }
 0x191   : > { %v621_v4 = vpack.c.bf16 %v618_v2, %v617_v1  ;;  %2340 = vmatpush3.bf16.msra.mxu0 %v2668_v0  ;;  %v622_v6 = vpack.c.bf16 %v620_v5, %v619_v3  ;;  %v2252_v7 = vld [vmem:[#allocation7] ss:$0 sm:$0xff]  ;;  %v2669_v40 = vld [vmem:[#allocation11] sm:$0xff]   ;;  %v2670_v41 = vld [vmem:[#allocation11 + $0x8] sm:$0xff]   ;;  %s3193_s17 = smov 96   ;;  %vm868_vm3 = vcmask 64512  }
 0x192   : > { %2345 = vmatprep.subr.bf16.mxu1 %v2669_v40  ;;  %v2256_v56 = vld [vmem:[#allocation8] ss:$0 sm:$0xff]  ;;  %v2257_v62 = vld [vmem:[#allocation10] ss:$0 sm:$0xff]  ;;  %s3194_s18 = smov 64   ;;  %s3195_s13 = smov 8  }
 0x193   : > { %2341 = vmatprep.mubr.msk.bf16.mxu0 %vm638_vm0, %v621_v4  ;;  %2346 = vmatpush3.bf16.msra.mxu1 %v2669_v40  ;;  %s3196_s29 = smov 16   ;;  %s3197_s3 = smov 24   ;;  %vm1919_vm4 = vcmask 195584  }
 0x194   : > { %2342 = vmatmul.mubr.msk.bf16.vlgmr.msra.gmra.mrb[0].mxu0 %vm638_vm0, %v622_v6  ;;  %2347 = vmatprep.subr.bf16.mxu1 %v2670_v41  ;;  %s600_s16 = scalar_lea.vmem [#allocation20], %s3675_s5  ;;  %s2295_s25 = sshll.u32 %s3296_s26, 9 }
 0x195   : > { %s2031_s2 = sshll.u32 %s600_s16, 4  ;;  %s4235_s6 = sld [smem:[#allocation42_spill]]  ;;  %s4086_s2 = int_to_ptr.vmem [resolvable:$true] %s2031_s2 }
 0x196   : > { %s4098_s26 = scalar_lea.sflag [#allocation4], %s510_s14  ;;  %s3057_s10 = scalar_lea.vmem %s4086_s2, 512 }
 0x197   : > { %2348 = vmatpush3.bf16.msra.mxu1 %v2670_v41  ;;  %p3058_p2 = scmp.ne.s32.totalorder %s4086_s2, %s3057_s10  ;;  %p4236_p11 = scmp.ne.s32.totalorder %s4202_s19, 0 }
 0x199   : > { %p3059_p7 = pnand %p3058_p2, %p4236_p11 }
 0x19b   : > { %s4092_s27 = scalar_lea.hbm %s4235_s6, %s2295_s25  ;;  %p3060_p13 = pneg %p3059_p7 }
 0x267   : > { %v2343_v8 = vpop.f32.mrb[0].mxu0 }
 0x268   : > { %v3711_v9 = vadd.f32 %v2343_v8, %v2252_v7  ;;  %v679_v10 = vpop.f32.mrb[1].mxu0 }
 0x269   : > { %v3713_v11 = vadd.f32 %v2252_v7, %v679_v10  ;;  %v2344_v12 = vpop.f32.mrb[2].mxu0 }
 0x26a   : > { %v3715_v13 = vadd.f32 %v2344_v12, %v2252_v7  ;;  %v682_v14 = vpop.f32.mrb[3].mxu0  ;;  %v701_v15 = vsel %vm694_vm1, %v3711_v9, 0.0 }
 0x26b   : > { %v3719_v16 = vadd.f32 %v2252_v7, %v682_v14  ;;  %702 = vadd.xlane.f32.xlu1 %v701_v15  ;;  %v695_v17 = vsel %vm694_vm1, %v3713_v11, 0.0  ;;  %v2258_v14 = vld [vmem:[#allocation13] ss:$0 sm:$0xff] }
 0x26c   : > { %696 = vadd.xlane.f32.xlu0 %v695_v17  ;;  %v704_v18 = vsel %vm694_vm1, %v3715_v13, 0.0 }
 0x26d   : > { %v698_v19 = vsel %vm694_vm1, %v3719_v16, 0.0 }
 0x26f   : > { %705 = vadd.xlane.f32.xlu1 %v704_v18 }
 0x270   : > { %699 = vadd.xlane.f32.xlu0 %v698_v19 }
 0x2f8   : > { %v703_v20 = vpop.xlane.xlu1 %702 }
 0x2f9   : > { %v710_v21 = vmul.f32 0.03125, %v703_v20  ;;  %v697_v22 = vpop.xlane.xlu0 %696 }
 0x2fa   : > { %v708_v23 = vmul.f32 0.03125, %v697_v22 }
 0x2fb   : > { %v714_v24 = vsub.f32 %v3711_v9, %v710_v21 }
 0x2fc   : > { %v712_v25 = vsub.f32 %v3713_v11, %v708_v23  ;;  %v706_v26 = vpop.xlane.xlu1 %705  ;;  %v3188_v23 = vmov 0.0  }
 0x2fd   : > { %v711_v27 = vmul.f32 0.03125, %v706_v26  ;;  %v700_v28 = vpop.xlane.xlu0 %699  ;;  %v718_v34 = vmul.f32 %v714_v24, %v714_v24  ;;  %2353 = vmatprep.subr.bf16.mxu0 %v3188_v23  ;;  %2359 = vmatprep.subr.bf16.mxu1 %v3188_v23 }
 0x2fe   : > { %v709_v29 = vmul.f32 0.03125, %v700_v28  ;;  %v716_v30 = vmul.f32 %v712_v25, %v712_v25  ;;  %2355 = vmatprep.mubr.msk.bf16.mxu0 %vm3191_vm2, %v3188_v23 }
 0x2ff   : > { %v715_v31 = vsub.f32 %v3715_v13, %v711_v27  ;;  %v726_v36 = vsel %vm694_vm1, %v718_v34, 0.0 }
 0x300   : > { %v713_v32 = vsub.f32 %v3719_v16, %v709_v29  ;;  %v720_v33 = vsel %vm694_vm1, %v716_v30, 0.0 }
 0x301   : > { %721 = vadd.xlane.f32.xlu0 %v720_v33  ;;  %v719_v38 = vmul.f32 %v715_v31, %v715_v31 }
 0x302   : > { %v717_v35 = vmul.f32 %v713_v32, %v713_v32 }
 0x303   : > { %v729_v39 = vsel %vm694_vm1, %v719_v38, 0.0 }
 0x304   : > { %v723_v37 = vsel %vm694_vm1, %v717_v35, 0.0 }
 0x305   : > { %727 = vadd.xlane.f32.xlu0 %v726_v36  ;;  %724 = vadd.xlane.f32.xlu1 %v723_v37 }
 0x309   : > { %730 = vadd.xlane.f32.xlu1 %v729_v39 }
 0x38e   : > { %v722_v42 = vpop.xlane.xlu0 %721 }
 0x38f   : > { %v732_v43 = vmul.f32 0.03125, %v722_v42 }
 0x391   : > { %v736_v44 = vadd.f32 1e-05, %v732_v43 }
 0x392   : > { %v725_v45 = vpop.xlane.xlu1 %724  ;;  %v728_v46 = vpop.xlane.xlu0 %727 }
 0x393   : > { %2673 = vrsqrt.f32 %v736_v44  ;;  %v733_v47 = vmul.f32 0.03125, %v725_v45  ;;  %v734_v48 = vmul.f32 0.03125, %v728_v46 }
 0x395   : > { %v737_v49 = vadd.f32 1e-05, %v733_v47  ;;  %v738_v50 = vadd.f32 1e-05, %v734_v48 }
 0x396   : > { %v731_v51 = vpop.xlane.xlu1 %730 }
 0x397   : > { %2675 = vrsqrt.f32 %v737_v49  ;;  %v735_v52 = vmul.f32 0.03125, %v731_v51  ;;  %v1260_v49 = vld [vmem:[#allocation17 + $0x8] sm:$0xff] }
 0x398   : > { %2677 = vrsqrt.f32 %v738_v50 }
 0x399   : > { %v739_v53 = vadd.f32 1e-05, %v735_v52  ;;  %v3822_v52 = vld [vmem:[%s3703_s7 + $0x8] sm:$0xff] }
 0x39b   : > { %2679 = vrsqrt.f32 %v739_v53 }
 0x39d   : > { %v2674_v54 = vpop.eup %2673 }
 0x39e   : > { %v744_v55 = vmul.f32 %v2674_v54, %v712_v25 }
 0x3a0   : > { %v755_v60 = vmul.f32 %v2256_v56, %v744_v55  ;;  %v1259_v55 = vld [vmem:[#allocation17] sm:$0xff] }
 0x3a1   : > { %v2676_v57 = vpop.eup %2675 }
 0x3a2   : > { %v2678_v58 = vpop.eup %2677  ;;  %v745_v59 = vmul.f32 %v2676_v57, %v713_v32  ;;  %v766_v2 = vadd.f32 %v2257_v62, %v755_v60 }
 0x3a3   : > { %v746_v61 = vmul.f32 %v2678_v58, %v714_v24 }
 0x3a4   : > { %v756_v63 = vmul.f32 %v2256_v56, %v745_v59  ;;  %v3830_v59 = vld [vmem:[%s3703_s7 + $0x10] sm:$0xff] }
 0x3a5   : > { %v2680_v0 = vpop.eup %2679  ;;  %v757_v4 = vmul.f32 %v2256_v56, %v746_v61 }
 0x3a6   : > { %v747_v1 = vmul.f32 %v2680_v0, %v715_v31  ;;  %v767_v3 = vadd.f32 %v2257_v62, %v756_v63  ;;  %v3833_v0 = vld [vmem:[%s3703_s7] sm:$0xff] }
 0x3a7   : > { %v768_v7 = vadd.f32 %v2257_v62, %v757_v4 }
 0x3a8   : > { %v770_v5 = vpack.c.bf16 %v767_v3, %v766_v2  ;;  %v758_v6 = vmul.f32 %v2256_v56, %v747_v1 }
 0x3aa   : > { %2349 = vmatprep.mubr.msk.bf16.mxu1 %vm694_vm1, %v770_v5  ;;  %v769_v8 = vadd.f32 %v2257_v62, %v758_v6  ;;  %v3844_v6 = vld [vmem:[%s3703_s7 + $0x18] sm:$0xff]  ;;  %s3198_s7 = smov [#allocation20]  }
 0x3ac   : > { %v771_v10 = vpack.c.bf16 %v769_v8, %v768_v7 }
 0x3ae   : > { %2350 = vmatmul.mubr.msk.bf16.vlgmr.msra.gmra.mrb[0].mxu1 %vm694_vm1, %v771_v10 }
 0x3af   : > { %2361 = vmatprep.mubr.msk.bf16.mxu1 %vm3191_vm2, %v3188_v23 }
 0x481   : > { %v2351_v12 = vpop.f32.mrb[0].mxu1 }
 0x482   : > { %v835_v15 = vpop.f32.mrb[1].mxu1  ;;  %v844_v18 = vadd.f32 %v2351_v12, %v2258_v14  ;;  %v1261_v12 = vld [vmem:[#allocation17 + $0x10] sm:$0xff] }
 0x483   : > { %v2352_v17 = vpop.f32.mrb[2].mxu1  ;;  %v836_v21 = vadd.f32 %v2258_v14, %v835_v15  ;;  %v1262_v15 = vld [vmem:[#allocation17 + $0x18] sm:$0xff] }
 0x484   : > { %v847_v19 = vadd.f32 %v2352_v17, %v2258_v14  ;;  %v838_v20 = vpop.f32.mrb[3].mxu1 }
 0x485   : > { %v839_v22 = vadd.f32 %v2258_v14, %v838_v20 }
 0x486   : > { %v3739_v24 = vpack.c.bf16 %v847_v19, %v844_v18 }
 0x487   : > { %v3741_v25 = vpack.c.bf16 %v839_v22, %v836_v21 }
 0x488   : > { %856 = vrot.lane.b32.xlu1 %v3739_v24, %s3189_s0 }
 0x489   : > { %854 = vrot.lane.b32.xlu0 %v3741_v25, %s3189_s0  ;;  %s3061_s0 = sshll.u32 %s3198_s7, 4  ;;  %s3062_s0 = int_to_ptr.vmem [resolvable:$false] %s3061_s0 }
 0x48a   : > { %p3064_p8 = scmp.lt.s32.totalorder %s4086_s2, %s3062_s0 }
 0x48c   : > { %858 = vrot.lane.b32.xlu1 %v3741_v25, %s3190_s30 }
 0x48d   : > { %862 = vrot.lane.b32.xlu0 %v3741_v25, %s3192_s1 }
 0x490   : > { %860 = vrot.lane.b32.xlu1 %v3739_v24, %s3190_s30  ;;  %s3063_s30 = scalar_lea.vmem %s3062_s0, 1024 }
 0x491   : > { %866 = vrot.lane.b32.xlu0 %v3741_v25, %s3193_s17  ;;  %p3065_p12 = scmp.lt.s32.totalorder %s3063_s30, %s3057_s10 }
 0x493   : > { %p3066_p1 = por %p3065_p12, %p3064_p8 }
 0x494   : > { %864 = vrot.lane.b32.xlu1 %v3739_v24, %s3192_s1 }
 0x495   : > { %p3067_p0 = pnand %p3066_p1, %p3060_p13 }
 0x498   : > { %916 = vrot.lane.b32.xlu1 %v3739_v24, %s3193_s17 }
 0x4fa   : > { %v3755_v26 = vpop.permute.xlu1 %856 }
 0x4fb   : > { %1014 = vrot.lane.b32.xlu1 %v3755_v26, %s3193_s17  ;;  %v3758_v27 = vpop.permute.xlu0 %854 }
 0x4fc   : > { %965 = vrot.lane.b32.xlu0 %v3758_v27, %s3193_s17 }
 0x4fe   : > { %v3761_v28 = vpop.permute.xlu1 %858 }
 0x4ff   : > { %v3763_v29 = vpop.permute.xlu0 %862 }
 0x500   : > { %1063 = vrot.lane.b32.xlu0 %v3761_v28, %s3193_s17 }
 0x502   : > { %v3766_v30 = vpop.permute.xlu1 %860 }
 0x503   : > { %1112 = vrot.lane.b32.xlu1 %v3766_v30, %s3193_s17  ;;  %v867_v31 = vpop.permute.xlu0 %866 }
 0x504   : > { %v873_v32 = vsel %vm868_vm3, %v867_v31, 0  ;;  %1161 = vrot.lane.b32.xlu0 %v3763_v29, %s3193_s17 }
 0x505   : > { %2354 = vmatpush3.bf16.xpose.msra.mxu0 %v873_v32 }
 0x506   : > { %v3771_v33 = vpop.permute.xlu1 %864  ;;  %2365 = vmatprep.subr.bf16.mxu0 %v3188_v23 }
 0x507   : > { %1210 = vrot.lane.b32.xlu1 %v3771_v33, %s3193_s17 }
 0x50a   : > { %v917_v34 = vpop.permute.xlu1 %916 }
 0x50b   : > { %v922_v35 = vsel %vm868_vm3, %v917_v34, 0 }
 0x50c   : > { %2356 = vmatmul.mubr.msk.bf16.vlgmr.msra.gmra.mrb[4].mxu0 %vm868_vm3, %v3741_v25  ;;  %2360 = vmatpush3.bf16.xpose.msra.mxu1 %v922_v35 }
 0x50d   : > { %2371 = vmatprep.subr.bf16.mxu1 %v3188_v23  ;;  %2367 = vmatprep.mubr.msk.bf16.mxu0 %vm3191_vm2, %v3188_v23 }
 0x513   : > { %2362 = vmatmul.mubr.msk.bf16.vlgmr.msra.gmra.mrb[4].mxu1 %vm868_vm3, %v3739_v24 }
 0x514   : > { %2373 = vmatprep.mubr.msk.bf16.mxu1 %vm3191_vm2, %v3188_v23 }
 0x56d   : > { %v1015_v36 = vpop.permute.xlu1 %1014 }
 0x56e   : > { %v1020_v37 = vsel %vm868_vm3, %v1015_v36, 0  ;;  %v966_v38 = vpop.permute.xlu0 %965 }
 0x56f   : > { %v971_v39 = vsel %vm868_vm3, %v966_v38, 0  ;;  %2372 = vmatpush3.bf16.xpose.msra.mxu1 %v1020_v37 }
 0x570   : > { %2366 = vmatpush3.bf16.xpose.msra.mxu0 %v971_v39  ;;  %2383 = vmatprep.subr.bf16.mxu1 %v3188_v23 }
 0x571   : > { %2377 = vmatprep.subr.bf16.mxu0 %v3188_v23 }
 0x572   : > { %v1064_v40 = vpop.permute.xlu0 %1063 }
 0x573   : > { %v1069_v43 = vsel %vm868_vm3, %v1064_v40, 0 }
 0x575   : > { %v1113_v41 = vpop.permute.xlu1 %1112 }
 0x576   : > { %v1118_v42 = vsel %vm868_vm3, %v1113_v41, 0  ;;  %2374 = vmatmul.mubr.msk.bf16.vlgmr.msra.gmra.mrb[8].mxu1 %vm868_vm3, %v3755_v26  ;;  %v1162_v45 = vpop.permute.xlu0 %1161  ;;  %v1263_v41 = vld [vmem:[#allocation17 + $0x20] sm:$0xff] }
 0x577   : > { %2368 = vmatmul.mubr.msk.bf16.vlgmr.msra.gmra.mrb[8].mxu0 %vm868_vm3, %v3758_v27  ;;  %2384 = vmatpush3.bf16.xpose.msra.mxu1 %v1118_v42  ;;  %v1167_v47 = vsel %vm868_vm3, %v1162_v45, 0  ;;  %v1264_v45 = vld [vmem:[#allocation17 + $0x28] sm:$0xff] }
 0x578   : > { %2378 = vmatpush3.bf16.xpose.msra.mxu0 %v1069_v43  ;;  %2385 = vmatprep.mubr.msk.bf16.mxu1 %vm3191_vm2, %v3188_v23 }
 0x579   : > { %2379 = vmatprep.mubr.msk.bf16.mxu0 %vm3191_vm2, %v3188_v23  ;;  %2395 = vmatprep.subr.bf16.mxu1 %v3188_v23  ;;  %v1211_v44 = vpop.permute.xlu1 %1210 }
 0x57a   : > { %2389 = vmatprep.subr.bf16.mxu0 %v3188_v23  ;;  %v1216_v46 = vsel %vm868_vm3, %v1211_v44, 0 }
 0x57e   : > { %2386 = vmatmul.mubr.msk.bf16.vlgmr.msra.gmra.mrb[12].mxu1 %vm868_vm3, %v3766_v30 }
 0x57f   : > { %2380 = vmatmul.mubr.msk.bf16.vlgmr.msra.gmra.mrb[12].mxu0 %vm868_vm3, %v3761_v28  ;;  %2396 = vmatpush3.bf16.xpose.msra.mxu1 %v1216_v46 }
 0x580   : > { %2390 = vmatpush3.bf16.xpose.msra.mxu0 %v1167_v47  ;;  %2397 = vmatprep.mubr.msk.bf16.mxu1 %vm3191_vm2, %v3188_v23 }
 0x581   : > { %2391 = vmatprep.mubr.msk.bf16.mxu0 %vm3191_vm2, %v3188_v23  ;;  %2407 = vmatprep.subr.bf16.mxu1 %v3188_v23 }
 0x582   : > { %2401 = vmatprep.subr.bf16.mxu0 %v3188_v23 }
 0x586   : > { %2398 = vmatmul.mubr.msk.bf16.vlgmr.msra.gmra.mrb[16].mxu1 %vm868_vm3, %v3771_v33 }
 0x587   : > { %2392 = vmatmul.mubr.msk.bf16.vlgmr.msra.gmra.mrb[16].mxu0 %vm868_vm3, %v3763_v29  ;;  %2409 = vmatprep.mubr.msk.bf16.mxu1 %vm3191_vm2, %v3188_v23 }
 0x588   : > { %2403 = vmatprep.mubr.msk.bf16.mxu0 %vm3191_vm2, %v3188_v23 }
 0x5df   : > { %v909_v48 = vpop.f32.mrb[4].mxu0 }
 0x5e0   : > { %v2357_v50 = vpop.f32.mrb[5].mxu0  ;;  %v1267_v60 = vadd.f32 %v1259_v55, %v909_v48 }
 0x5e1   : > { %v912_v51 = vpop.f32.mrb[6].mxu0 }
 0x5e2   : > { %v1268_v53 = vadd.f32 %v1260_v49, %v912_v51  ;;  %v2358_v54 = vpop.f32.mrb[7].mxu0  ;;  %v3841_v5 = vadd.f32 %v3833_v0, %v1267_v60 }
 0x5e4   : > { %v3825_v56 = vadd.f32 %v3822_v52, %v1268_v53  ;;  %v1303_v7 = vsel %vm638_vm0, %v3841_v5, -inf }
 0x5e6   : > { %v958_v57 = vpop.f32.mrb[4].mxu1  ;;  %v1306_v58 = vsel %vm638_vm0, %v3825_v56, -inf }
 0x5e7   : > { %v1269_v61 = vadd.f32 %v1259_v55, %v958_v57  ;;  %v2363_v62 = vpop.f32.mrb[5].mxu1  ;;  %1307 = vmax.xlane.f32.xlu1 %v1306_v58 }
 0x5e8   : > { %v961_v63 = vpop.f32.mrb[6].mxu1 }
 0x5e9   : > { %v2364_v1 = vpop.f32.mrb[7].mxu1  ;;  %v3836_v2 = vadd.f32 %v3830_v59, %v1269_v61  ;;  %v1270_v3 = vadd.f32 %v1260_v49, %v961_v63 }
 0x5eb   : > { %v1309_v4 = vsel %vm638_vm0, %v3836_v2, -inf  ;;  %v3849_v8 = vadd.f32 %v3844_v6, %v1270_v3 }
 0x5ec   : > { %1310 = vmax.xlane.f32.xlu0 %v1309_v4  ;;  %v1265_v4 = vld [vmem:[#allocation17 + $0x30] sm:$0xff] }
 0x5ed   : > { %v1312_v10 = vsel %vm638_vm0, %v3849_v8, -inf }
 0x5f0   : > { %1304 = vmax.xlane.f32.xlu0 %v1303_v7 }
 0x5f4   : > { %1313 = vmax.xlane.f32.xlu0 %v1312_v10 }
 0x649   : > { %v1056_v14 = vpop.f32.mrb[8].mxu1 }
 0x64a   : > { %v1273_v17 = vadd.f32 %v1261_v12, %v1056_v14  ;;  %v1007_v18 = vpop.f32.mrb[8].mxu0  ;;  %v2375_v19 = vpop.f32.mrb[9].mxu1 }
 0x64b   : > { %v1271_v20 = vadd.f32 %v1261_v12, %v1007_v18  ;;  %v2369_v21 = vpop.f32.mrb[9].mxu0  ;;  %v1059_v22 = vpop.f32.mrb[10].mxu1 }
 0x64c   : > { %v1274_v31 = vadd.f32 %v1262_v15, %v1059_v22  ;;  %v1010_v32 = vpop.f32.mrb[10].mxu0  ;;  %v2376_v34 = vpop.f32.mrb[11].mxu1  ;;  %v3854_v35 = vadd.f32 %v3830_v59, %v1273_v17 }
 0x64d   : > { %v1272_v36 = vadd.f32 %v1262_v15, %v1010_v32  ;;  %v2370_v37 = vpop.f32.mrb[11].mxu0  ;;  %v3862_v40 = vadd.f32 %v3833_v0, %v1271_v20 }
 0x64e   : > { %v1321_v38 = vsel %vm638_vm0, %v3854_v35, -inf  ;;  %v3859_v39 = vadd.f32 %v3844_v6, %v1274_v31 }
 0x64f   : > { %1322 = vmax.xlane.f32.xlu0 %v1321_v38  ;;  %v3867_v43 = vadd.f32 %v3822_v52, %v1272_v36  ;;  %v1315_v49 = vsel %vm638_vm0, %v3862_v40, -inf }
 0x650   : > { %v1324_v42 = vsel %vm638_vm0, %v3859_v39, -inf }
 0x651   : > { %v1154_v44 = vpop.f32.mrb[12].mxu1  ;;  %1325 = vmax.xlane.f32.xlu1 %v1324_v42  ;;  %v1318_v58 = vsel %vm638_vm0, %v3867_v43, -inf }
 0x652   : > { %v1277_v46 = vadd.f32 %v1263_v41, %v1154_v44  ;;  %v1105_v47 = vpop.f32.mrb[12].mxu0  ;;  %v2387_v48 = vpop.f32.mrb[13].mxu1 }
 0x653   : > { %v1275_v50 = vadd.f32 %v1263_v41, %v1105_v47  ;;  %v1157_v51 = vpop.f32.mrb[14].mxu1  ;;  %1316 = vmax.xlane.f32.xlu0 %v1315_v49  ;;  %v2381_v53 = vpop.f32.mrb[13].mxu0 }
 0x654   : > { %v1278_v54 = vadd.f32 %v1264_v45, %v1157_v51  ;;  %v1108_v55 = vpop.f32.mrb[14].mxu0  ;;  %v2388_v57 = vpop.f32.mrb[15].mxu1  ;;  %v3874_v60 = vadd.f32 %v3830_v59, %v1277_v46 }
 0x655   : > { %v1276_v61 = vadd.f32 %v1264_v45, %v1108_v55  ;;  %1319 = vmax.xlane.f32.xlu1 %v1318_v58  ;;  %v2382_v62 = vpop.f32.mrb[15].mxu0  ;;  %v3882_v3 = vadd.f32 %v3833_v0, %v1275_v50 }
 0x656   : > { %v1333_v63 = vsel %vm638_vm0, %v3874_v60, -inf  ;;  %v3879_v1 = vadd.f32 %v3844_v6, %v1278_v54 }
 0x657   : > { %1334 = vmax.xlane.f32.xlu0 %v1333_v63  ;;  %v3887_v10 = vadd.f32 %v3822_v52, %v1276_v61  ;;  %v1327_v18 = vsel %vm638_vm0, %v3882_v3, -inf }
 0x658   : > { %v1336_v7 = vsel %vm638_vm0, %v3879_v1, -inf }
 0x659   : > { %v1252_v12 = vpop.f32.mrb[16].mxu1  ;;  %1337 = vmax.xlane.f32.xlu1 %v1336_v7  ;;  %v1330_v32 = vsel %vm638_vm0, %v3887_v10, -inf }
 0x65a   : > { %v1281_v14 = vadd.f32 %v1265_v4, %v1252_v12  ;;  %v1203_v15 = vpop.f32.mrb[16].mxu0  ;;  %v2399_v17 = vpop.f32.mrb[17].mxu1 }
 0x65b   : > { %v1279_v19 = vadd.f32 %v1265_v4, %v1203_v15  ;;  %v1255_v20 = vpop.f32.mrb[18].mxu1  ;;  %1328 = vmax.xlane.f32.xlu0 %v1327_v18  ;;  %v2393_v21 = vpop.f32.mrb[17].mxu0 }
 0x65c   : > { %v1206_v22 = vpop.f32.mrb[18].mxu0  ;;  %v2400_v31 = vpop.f32.mrb[19].mxu1  ;;  %v3894_v34 = vadd.f32 %v3830_v59, %v1281_v14 }
 0x65d   : > { %1331 = vmax.xlane.f32.xlu1 %v1330_v32  ;;  %v2394_v36 = vpop.f32.mrb[19].mxu0  ;;  %v3899_v38 = vadd.f32 %v3833_v0, %v1279_v19 }
 0x65e   : > { %v1345_v37 = vsel %vm638_vm0, %v3894_v34, -inf }
 0x65f   : > { %1346 = vmax.xlane.f32.xlu0 %v1345_v37  ;;  %v1339_v41 = vsel %vm638_vm0, %v3899_v38, -inf }
 0x663   : > { %1340 = vmax.xlane.f32.xlu0 %v1339_v41 }
 0x66e   : > { %1534 = vrot.lane.b32.xlu1 %v3739_v24, %s3194_s18  ;;  %v1266_v24 = vld [vmem:[#allocation17 + $0x38] sm:$0xff] }
 0x66f   : > { %v1280_v47 = vadd.f32 %v1266_v24, %v1206_v22 }
 0x672   : > { %1581 = vrot.lane.b32.xlu1 %v3758_v27, %s3194_s18  ;;  %v1282_v27 = vadd.f32 %v1266_v24, %v1255_v20 }
 0x674   : > { %v1308_v51 = vpop.xlane.xlu1 %1307 }
 0x675   : > { %v1352_v53 = vsub.f32 %v3825_v56, %v1308_v51 }
 0x676   : > { %1628 = vrot.lane.b32.xlu1 %v3755_v26, %s3194_s18  ;;  %v3916_v26 = vadd.f32 %v3844_v6, %v1282_v27 }
 0x677   : > { %v1369_v55 = vmul.f32 1.442695, %v1352_v53 }
 0x679   : > { %1487 = vrot.lane.b32.xlu0 %v3741_v25, %s3194_s18  ;;  %v1311_v59 = vpop.xlane.xlu0 %1310 }
 0x67a   : > { %v1353_v0 = vsub.f32 %v3836_v2, %v1311_v59  ;;  %v3923_v2 = vadd.f32 %v3822_v52, %v1280_v47 }
 0x67c   : > { %v1371_v44 = vmul.f32 1.442695, %v1353_v0  ;;  %v1342_v49 = vsel %vm638_vm0, %v3923_v2, -inf }
 0x67d   : > { %1675 = vrot.lane.b32.xlu0 %v3761_v28, %s3194_s18  ;;  %v1305_v42 = vpop.xlane.xlu0 %1304  ;;  %v1348_v28 = vsel %vm638_vm0, %v3916_v26, -inf }
 0x67e   : > { %v1351_v45 = vsub.f32 %v3841_v5, %v1305_v42  ;;  %2681 = vpow2.f32 %v1371_v44 }
 0x680   : > { %v1367_v46 = vmul.f32 1.442695, %v1351_v45 }
 0x681   : > { %v1314_v52 = vpop.xlane.xlu0 %1313 }
 0x682   : > { %2683 = vpow2.f32 %v1367_v46  ;;  %v1354_v50 = vsub.f32 %v3849_v8, %v1314_v52 }
 0x684   : > { %v1373_v54 = vmul.f32 1.442695, %v1354_v50 }
 0x686   : > { %2685 = vpow2.f32 %v1373_v54 }
 0x687   : > { %2687 = vpow2.f32 %v1369_v55 }
 0x688   : > { %v3918_v25 = vpop.eup %2681 }
 0x689   : > { %v1405_v5 = vsel %vm638_vm0, %v3918_v25, 0.0 }
 0x68c   : > { %v3927_v48 = vpop.eup %2683 }
 0x68d   : > { %v1399_v6 = vsel %vm638_vm0, %v3927_v48, 0.0 }
 0x690   : > { %v3937_v57 = vpop.eup %2685 }
 0x691   : > { %v1408_v58 = vsel %vm638_vm0, %v3937_v57, 0.0  ;;  %v3941_v61 = vpop.eup %2687 }
 0x69a   : > { %1349 = vmax.xlane.f32.xlu1 %v1348_v28 }
 0x69c   : > { %1406 = vadd.xlane.f32.xlu0 %v1405_v5 }
 0x69e   : > { %1343 = vmax.xlane.f32.xlu1 %v1342_v49 }
 0x6a0   : > { %1400 = vadd.xlane.f32.xlu0 %v1399_v6 }
 0x6af   : > { %1722 = vrot.lane.b32.xlu1 %v3766_v30, %s3194_s18  ;;  %v1402_v30 = vsel %vm638_vm0, %v3941_v61, 0.0 }
 0x6d3   : > { %1409 = vadd.xlane.f32.xlu1 %v1408_v58 }
 0x6d7   : > { %1403 = vadd.xlane.f32.xlu1 %v1402_v30 }
 0x6dc   : > { %v1323_v8 = vpop.xlane.xlu0 %1322 }
 0x6dd   : > { %v1357_v62 = vsub.f32 %v3854_v35, %v1323_v8 }
 0x6de   : > { %v1326_v56 = vpop.xlane.xlu1 %1325 }
 0x6df   : > { %v1379_v63 = vmul.f32 1.442695, %v1357_v62  ;;  %v1358_v4 = vsub.f32 %v3859_v39, %v1326_v56 }
 0x6e0   : > { %v1317_v7 = vpop.xlane.xlu0 %1316 }
 0x6e1   : > { %2689 = vpow2.f32 %v1379_v63  ;;  %v1381_v12 = vmul.f32 1.442695, %v1358_v4  ;;  %v1355_v14 = vsub.f32 %v3862_v40, %v1317_v7 }
 0x6e2   : > { %v1320_v15 = vpop.xlane.xlu1 %1319 }
 0x6e3   : > { %2691 = vpow2.f32 %v1381_v12  ;;  %v1375_v17 = vmul.f32 1.442695, %v1355_v14  ;;  %v1356_v18 = vsub.f32 %v3867_v43, %v1320_v15 }
 0x6e4   : > { %v1335_v19 = vpop.xlane.xlu0 %1334 }
 0x6e5   : > { %2693 = vpow2.f32 %v1375_v17  ;;  %v1377_v20 = vmul.f32 1.442695, %v1356_v18  ;;  %v1361_v21 = vsub.f32 %v3874_v60, %v1335_v19 }
 0x6e6   : > { %v1338_v35 = vpop.xlane.xlu1 %1337 }
 0x6e7   : > { %2695 = vpow2.f32 %v1377_v20  ;;  %v1387_v22 = vmul.f32 1.442695, %v1361_v21  ;;  %v1362_v39 = vsub.f32 %v3879_v1, %v1338_v35 }
 0x6e8   : > { %v1329_v31 = vpop.xlane.xlu0 %1328 }
 0x6e9   : > { %2697 = vpow2.f32 %v1387_v22  ;;  %v1389_v32 = vmul.f32 1.442695, %v1362_v39  ;;  %v1359_v40 = vsub.f32 %v3882_v3, %v1329_v31 }
 0x6ea   : > { %v1332_v36 = vpop.xlane.xlu1 %1331 }
 0x6eb   : > { %v3952_v37 = vpop.eup %2689  ;;  %2699 = vpow2.f32 %v1389_v32  ;;  %v1383_v43 = vmul.f32 1.442695, %v1359_v40  ;;  %v1360_v41 = vsub.f32 %v3887_v10, %v1332_v36 }
 0x6ec   : > { %v1347_v59 = vpop.xlane.xlu0 %1346  ;;  %v1417_v60 = vsel %vm638_vm0, %v3952_v37, 0.0 }
 0x6ed   : > { %v3957_v0 = vpop.eup %2691  ;;  %2701 = vpow2.f32 %v1383_v43  ;;  %v1385_v1 = vmul.f32 1.442695, %v1360_v41  ;;  %v1365_v42 = vsub.f32 %v3894_v34, %v1347_v59  ;;  %1418 = vadd.xlane.f32.xlu0 %v1417_v60 }
 0x6ee   : > { %v1535_v44 = vpop.permute.xlu1 %1534  ;;  %v1420_v3 = vsel %vm638_vm0, %v3957_v0, 0.0 }
 0x6ef   : > { %v3962_v45 = vpop.eup %2693  ;;  %2703 = vpow2.f32 %v1385_v1  ;;  %v1395_v24 = vmul.f32 1.442695, %v1365_v42  ;;  %2408 = vmatpush3.bf16.msra.mxu1 %v1535_v44  ;;  %1421 = vadd.xlane.f32.xlu1 %v1420_v3 }
 0x6f0   : > { %v1341_v10 = vpop.xlane.xlu0 %1340  ;;  %v1411_v46 = vsel %vm638_vm0, %v3962_v45, 0.0  ;;  %2419 = vmatprep.subr.bf16.mxu1 %v3188_v23 }
 0x6f1   : > { %v3967_v27 = vpop.eup %2695  ;;  %2705 = vpow2.f32 %v1395_v24  ;;  %v1363_v34 = vsub.f32 %v3899_v38, %v1341_v10  ;;  %1412 = vadd.xlane.f32.xlu0 %v1411_v46 }
 0x6f2   : > { %v1414_v47 = vsel %vm638_vm0, %v3967_v27, 0.0  ;;  %v1582_v62 = vpop.permute.xlu1 %1581 }
 0x6f3   : > { %v3972_v28 = vpop.eup %2697  ;;  %v1391_v5 = vmul.f32 1.442695, %v1363_v34  ;;  %1415 = vadd.xlane.f32.xlu1 %v1414_v47 }
 0x6f4   : > { %v1488_v49 = vpop.permute.xlu0 %1487  ;;  %v1429_v6 = vsel %vm638_vm0, %v3972_v28, 0.0 }
 0x6f5   : > { %v3976_v52 = vpop.eup %2699  ;;  %2707 = vpow2.f32 %v1391_v5  ;;  %1430 = vadd.xlane.f32.xlu0 %v1429_v6  ;;  %2402 = vmatpush3.bf16.msra.mxu0 %v1488_v49 }
 0x6f6   : > { %v1432_v38 = vsel %vm638_vm0, %v3976_v52, 0.0  ;;  %2413 = vmatprep.subr.bf16.mxu0 %v3188_v23  ;;  %v1629_v56 = vpop.permute.xlu1 %1628 }
 0x6f7   : > { %v3981_v50 = vpop.eup %2701  ;;  %1433 = vadd.xlane.f32.xlu1 %v1432_v38 }
 0x6f8   : > { %v1423_v51 = vsel %vm638_vm0, %v3981_v50, 0.0 }
 0x6f9   : > { %v3985_v53 = vpop.eup %2703  ;;  %1424 = vadd.xlane.f32.xlu0 %v1423_v51 }
 0x6fa   : > { %v1426_v54 = vsel %vm638_vm0, %v3985_v53, 0.0 }
 0x6fb   : > { %v3989_v55 = vpop.eup %2705  ;;  %1427 = vadd.xlane.f32.xlu1 %v1426_v54 }
 0x6fc   : > { %v1441_v58 = vsel %vm638_vm0, %v3989_v55, 0.0 }
 0x6fd   : > { %1442 = vadd.xlane.f32.xlu0 %v1441_v58 }
 0x6ff   : > { %v3993_v30 = vpop.eup %2707 }
 0x700   : > { %v1435_v8 = vsel %vm638_vm0, %v3993_v30, 0.0 }
 0x701   : > { %1436 = vadd.xlane.f32.xlu0 %v1435_v8 }
 0x717   : > { %1769 = vrot.lane.b32.xlu0 %v3763_v29, %s3194_s18 }
 0x727   : > { %v1350_v63 = vpop.xlane.xlu1 %1349 }
 0x728   : > { %v1366_v4 = vsub.f32 %v3916_v26, %v1350_v63  ;;  %v4011_v26 = vpop.permute.xlu0 %1675 }
 0x72a   : > { %v1397_v7 = vmul.f32 1.442695, %v1366_v4 }
 0x72b   : > { %v1344_v12 = vpop.xlane.xlu1 %1343 }
 0x72c   : > { %2709 = vpow2.f32 %v1397_v7  ;;  %v1364_v14 = vsub.f32 %v3923_v2, %v1344_v12  ;;  %v1407_v2 = vpop.xlane.xlu0 %1406 }
 0x72e   : > { %v1393_v15 = vmul.f32 1.442695, %v1364_v14 }
 0x72f   : > { %v1723_v20 = vpop.permute.xlu1 %1722 }
 0x730   : > { %2711 = vpow2.f32 %v1393_v15  ;;  %v1401_v21 = vpop.xlane.xlu0 %1400 }
 0x731   : > { %2713 = vrcp.f32 %v1407_v2 }
 0x736   : > { %v4001_v17 = vpop.eup %2709 }
 0x737   : > { %v1444_v18 = vsel %vm638_vm0, %v4001_v17, 0.0 }
 0x738   : > { %1445 = vadd.xlane.f32.xlu1 %v1444_v18 }
 0x73a   : > { %v4005_v19 = vpop.eup %2711 }
 0x73b   : > { %v1438_v29 = vsel %vm638_vm0, %v4005_v19, 0.0  ;;  %v2714_v39 = vpop.eup %2713 }
 0x73c   : > { %1439 = vadd.xlane.f32.xlu1 %v1438_v29  ;;  %v1465_v32 = vmul.f32 %v2714_v39, %v3918_v25 }
 0x74d   : > { %1816 = vrot.lane.b32.xlu1 %v3771_v33, %s3194_s18 }
 0x760   : > { %v1410_v35 = vpop.xlane.xlu1 %1409 }
 0x761   : > { %2715 = vrcp.f32 %v1410_v35 }
 0x762   : > { %2717 = vrcp.f32 %v1401_v21 }
 0x764   : > { %v1404_v22 = vpop.xlane.xlu1 %1403 }
 0x765   : > { %2719 = vrcp.f32 %v1404_v22 }
 0x76b   : > { %v2716_v31 = vpop.eup %2715 }
 0x76c   : > { %v1466_v40 = vmul.f32 %v2716_v31, %v3937_v57  ;;  %v2718_v36 = vpop.eup %2717 }
 0x76d   : > { %v1463_v41 = vmul.f32 %v2718_v36, %v3927_v48 }
 0x76e   : > { %v1480_v43 = vpack.c.bf16 %v1466_v40, %v1465_v32 }
 0x76f   : > { %v2720_v33 = vpop.eup %2719 }
 0x770   : > { %v1464_v59 = vmul.f32 %v2720_v33, %v3941_v61  ;;  %2410 = vmatmul.mubr.msk.bf16.vlgmr.msra.gmra.mrb[20].mxu1 %vm638_vm0, %v1480_v43 }
 0x771   : > { %2420 = vmatpush3.bf16.msra.mxu1 %v1629_v56  ;;  %2421 = vmatprep.mubr.msk.bf16.mxu1 %vm3191_vm2, %v3188_v23 }
 0x772   : > { %v1479_v60 = vpack.c.bf16 %v1464_v59, %v1463_v41  ;;  %2431 = vmatprep.subr.bf16.mxu1 %v3188_v23 }
 0x774   : > { %2404 = vmatmul.mubr.msk.bf16.vlgmr.msra.gmra.mrb[20].mxu0 %vm638_vm0, %v1479_v60 }
 0x775   : > { %2414 = vmatpush3.bf16.msra.mxu0 %v1582_v62  ;;  %2415 = vmatprep.mubr.msk.bf16.mxu0 %vm3191_vm2, %v3188_v23 }
 0x776   : > { %2425 = vmatprep.subr.bf16.mxu0 %v3188_v23 }
 0x77a   : > { %v1419_v25 = vpop.xlane.xlu0 %1418 }
 0x77b   : > { %2721 = vrcp.f32 %v1419_v25 }
 0x77c   : > { %v1422_v48 = vpop.xlane.xlu1 %1421 }
 0x77d   : > { %2723 = vrcp.f32 %v1422_v48 }
 0x77e   : > { %v1413_v57 = vpop.xlane.xlu0 %1412 }
 0x77f   : > { %2725 = vrcp.f32 %v1413_v57 }
 0x780   : > { %v1416_v61 = vpop.xlane.xlu1 %1415 }
 0x781   : > { %2727 = vrcp.f32 %v1416_v61 }
 0x782   : > { %v1431_v1 = vpop.xlane.xlu0 %1430 }
 0x783   : > { %2729 = vrcp.f32 %v1431_v1 }
 0x784   : > { %v1434_v42 = vpop.xlane.xlu1 %1433 }
 0x785   : > { %v2722_v44 = vpop.eup %2721  ;;  %2731 = vrcp.f32 %v1434_v42 }
 0x786   : > { %v1425_v3 = vpop.xlane.xlu0 %1424  ;;  %v1469_v10 = vmul.f32 %v2722_v44, %v3952_v37 }
 0x787   : > { %v2724_v24 = vpop.eup %2723  ;;  %2733 = vrcp.f32 %v1425_v3 }
 0x788   : > { %v1470_v46 = vmul.f32 %v2724_v24, %v3957_v0  ;;  %v1428_v34 = vpop.xlane.xlu1 %1427 }
 0x789   : > { %v2726_v47 = vpop.eup %2725  ;;  %2735 = vrcp.f32 %v1428_v34 }
 0x78a   : > { %v1482_v5 = vpack.c.bf16 %v1470_v46, %v1469_v10  ;;  %v1467_v6 = vmul.f32 %v2726_v47, %v3962_v45  ;;  %v1443_v51 = vpop.xlane.xlu0 %1442  ;;  %v2671_v47 = vld [vmem:[#allocation14] sm:$0xff]  }
 0x78b   : > { %v2728_v49 = vpop.eup %2727  ;;  %2737 = vrcp.f32 %v1443_v51 }
 0x78c   : > { %v1468_v38 = vmul.f32 %v2728_v49, %v3967_v27  ;;  %2422 = vmatmul.mubr.msk.bf16.vlgmr.msra.gmra.mrb[24].mxu1 %vm638_vm0, %v1482_v5  ;;  %v2672_v5 = vld [vmem:[#allocation14 + $0x8] sm:$0xff]  }
 0x78d   : > { %v2730_v54 = vpop.eup %2729  ;;  %2432 = vmatpush3.bf16.msra.mxu1 %v1723_v20  ;;  %2433 = vmatprep.mubr.msk.bf16.mxu1 %vm3191_vm2, %v3188_v23 }
 0x78e   : > { %v1481_v37 = vpack.c.bf16 %v1468_v38, %v1467_v6  ;;  %2443 = vmatprep.subr.bf16.mxu1 %v3188_v23  ;;  %v1473_v58 = vmul.f32 %v2730_v54, %v3972_v28  ;;  %v1437_v27 = vpop.xlane.xlu0 %1436 }
 0x78f   : > { %v2732_v0 = vpop.eup %2731 }
 0x790   : > { %v1474_v8 = vmul.f32 %v2732_v0, %v3976_v52  ;;  %2416 = vmatmul.mubr.msk.bf16.vlgmr.msra.gmra.mrb[24].mxu0 %vm638_vm0, %v1481_v37 }
 0x791   : > { %v2734_v45 = vpop.eup %2733  ;;  %2426 = vmatpush3.bf16.msra.mxu0 %v4011_v26  ;;  %2427 = vmatprep.mubr.msk.bf16.mxu0 %vm3191_vm2, %v3188_v23 }
 0x792   : > { %v1484_v62 = vpack.c.bf16 %v1474_v8, %v1473_v58  ;;  %2437 = vmatprep.subr.bf16.mxu0 %v3188_v23  ;;  %v1471_v63 = vmul.f32 %v2734_v45, %v3981_v50  ;;  %v1770_v52 = vpop.permute.xlu0 %1769 }
 0x793   : > { %v2736_v56 = vpop.eup %2735 }
 0x794   : > { %v1472_v4 = vmul.f32 %v2736_v56, %v3985_v53  ;;  %2434 = vmatmul.mubr.msk.bf16.vlgmr.msra.gmra.mrb[28].mxu1 %vm638_vm0, %v1484_v62 }
 0x795   : > { %2445 = vmatprep.mubr.msk.bf16.mxu1 %vm3191_vm2, %v3188_v23  ;;  %v2738_v12 = vpop.eup %2737 }
 0x796   : > { %v1483_v28 = vpack.c.bf16 %v1472_v4, %v1471_v63  ;;  %v1477_v15 = vmul.f32 %v2738_v12, %v3989_v55 }
 0x798   : > { %2428 = vmatmul.mubr.msk.bf16.vlgmr.msra.gmra.mrb[28].mxu0 %vm638_vm0, %v1483_v28 }
 0x799   : > { %2438 = vmatpush3.bf16.msra.mxu0 %v1770_v52  ;;  %2439 = vmatprep.mubr.msk.bf16.mxu0 %vm3191_vm2, %v3188_v23 }
 0x79a   : > { %2449 = vmatprep.subr.bf16.mxu0 %v2671_v47 }
 0x7c5   : > { %v1446_v7 = vpop.xlane.xlu1 %1445 }
 0x7c6   : > { %2739 = vrcp.f32 %v1446_v7 }
 0x7c7   : > { %2741 = vrcp.f32 %v1437_v27 }
 0x7c9   : > { %v1440_v50 = vpop.xlane.xlu1 %1439 }
 0x7ca   : > { %2743 = vrcp.f32 %v1440_v50 }
 0x7cd   : > { %v1817_v53 = vpop.permute.xlu1 %1816 }
 0x7ce   : > { %2444 = vmatpush3.bf16.msra.mxu1 %v1817_v53 }
 0x7d0   : > { %v2740_v14 = vpop.eup %2739 }
 0x7d1   : > { %v1478_v18 = vmul.f32 %v2740_v14, %v4001_v17  ;;  %v2742_v29 = vpop.eup %2741 }
 0x7d2   : > { %v1475_v20 = vmul.f32 %v2742_v29, %v3993_v30 }
 0x7d3   : > { %v1486_v26 = vpack.c.bf16 %v1478_v18, %v1477_v15 }
 0x7d4   : > { %v2744_v2 = vpop.eup %2743 }
 0x7d5   : > { %v1476_v23 = vmul.f32 %v2744_v2, %v4005_v19  ;;  %2446 = vmatmul.mubr.msk.bf16.vlgmr.msra.gmra.mrb[32].mxu1 %vm638_vm0, %v1486_v26 }
 0x7d7   : > { %v1485_v21 = vpack.c.bf16 %v1476_v23, %v1475_v20 }
 0x7d9   : > { %2440 = vmatmul.mubr.msk.bf16.vlgmr.msra.gmra.mrb[32].mxu0 %vm638_vm0, %v1485_v21 }
 0x7da   : > { %2450 = vmatpush3.bf16.msra.mxu0 %v2671_v47 }
 0x7db   : > { %2451 = vmatprep.subr.bf16.mxu0 %v2672_v5 }
 0x7de   : > { %2452 = vmatpush3.bf16.msra.mxu0 %v2672_v5 }
 0x843   : > { %v4054_v35 = vpop.f32.mrb[20].mxu1 }
 0x844   : > { %v2411_v22 = vpop.f32.mrb[21].mxu1 }
 0x845   : > { %v1577_v39 = vpop.f32.mrb[22].mxu1 }
 0x846   : > { %v2412_v31 = vpop.f32.mrb[23].mxu1 }
 0x847   : > { %v4056_v55 = vpop.f32.mrb[20].mxu0 }
 0x848   : > { %v2405_v17 = vpop.f32.mrb[21].mxu0 }
 0x849   : > { %v4058_v32 = vpop.f32.mrb[22].mxu0 }
 0x84a   : > { %v2406_v40 = vpop.f32.mrb[23].mxu0 }
 0x85f   : > { %v1668_v36 = vpop.f32.mrb[24].mxu1 }
 0x860   : > { %v2423_v30 = vpop.f32.mrb[25].mxu1 }
 0x861   : > { %v1671_v43 = vpop.f32.mrb[26].mxu1 }
 0x862   : > { %v2638_v19 = vpack.i.bf16 %v1671_v43, %v1668_v36  ;;  %v2424_v33 = vpop.f32.mrb[27].mxu1 }
 0x863   : > { %v1621_v41 = vpop.f32.mrb[24].mxu0 }
 0x864   : > { %2639 = vrot.lane.b32.xlu1 %v2638_v19, %s3195_s13  ;;  %v2417_v59 = vpop.f32.mrb[25].mxu0 }
 0x865   : > { %v1624_v60 = vpop.f32.mrb[26].mxu0  ;;  %v2283_v59 = vld [vmem:[#allocation16] ss:$0 sm:$0xff] }
 0x866   : > { %v2643_v25 = vpack.i.bf16 %v1624_v60, %v1621_v41  ;;  %v2418_v48 = vpop.f32.mrb[27].mxu0 }
 0x867   : > { %v1762_v57 = vpop.f32.mrb[28].mxu1 }
 0x868   : > { %2644 = vrot.lane.b32.xlu0 %v2643_v25, %s3195_s13  ;;  %v2435_v61 = vpop.f32.mrb[29].mxu1 }
 0x869   : > { %v1765_v1 = vpop.f32.mrb[30].mxu1 }
 0x86a   : > { %v2648_v42 = vpack.i.bf16 %v1765_v1, %v1762_v57  ;;  %v2436_v44 = vpop.f32.mrb[31].mxu1 }
 0x86b   : > { %v1715_v3 = vpop.f32.mrb[28].mxu0 }
 0x86c   : > { %2649 = vrot.lane.b32.xlu1 %v2648_v42, %s3196_s29  ;;  %v2429_v24 = vpop.f32.mrb[29].mxu0 }
 0x86d   : > { %v1718_v10 = vpop.f32.mrb[30].mxu0 }
 0x86e   : > { %v2653_v46 = vpack.i.bf16 %v1718_v10, %v1715_v3  ;;  %v2430_v34 = vpop.f32.mrb[31].mxu0 }
 0x870   : > { %2654 = vrot.lane.b32.xlu0 %v2653_v46, %s3196_s29 }
 0x8a8   : > { %v1856_v49 = vpop.f32.mrb[32].mxu1 }
 0x8a9   : > { %v2447_v6 = vpop.f32.mrb[33].mxu1 }
 0x8aa   : > { %v1859_v38 = vpop.f32.mrb[34].mxu1 }
 0x8ab   : > { %v2663_v51 = vpack.i.bf16 %v1859_v38, %v1856_v49  ;;  %v2448_v54 = vpop.f32.mrb[35].mxu1 }
 0x8ac   : > { %v1809_v37 = vpop.f32.mrb[32].mxu0 }
 0x8ad   : > { %2664 = vrot.lane.b32.xlu1 %v2663_v51, %s3197_s3  ;;  %v2441_v0 = vpop.f32.mrb[33].mxu0 }
 0x8ae   : > { %v1812_v58 = vpop.f32.mrb[34].mxu0 }
 0x8af   : > { %v2658_v8 = vpack.i.bf16 %v1812_v58, %v1809_v37  ;;  %v2442_v45 = vpop.f32.mrb[35].mxu0 }
 0x8b1   : > { %2659 = vrot.lane.b32.xlu0 %v2658_v8, %s3197_s3 }
 0x8d6   : > { %v2640_v27 = vpop.permute.xlu1 %2639 }
 0x8d7   : > { %v2642_v63 = vunpack.i.h.bf16 %v2640_v27  ;;  %v2641_v4 = vunpack.i.l.bf16 %v2640_v27 }
 0x8d9   : > { %v1914_v50 = vsel %vm868_vm3, %v1577_v39, %v2642_v63  ;;  %v1913_v53 = vsel %vm868_vm3, %v4054_v35, %v2641_v4 }
 0x8da   : > { %v2645_v62 = vpop.permute.xlu0 %2644 }
 0x8db   : > { %v2647_v14 = vunpack.i.h.bf16 %v2645_v62  ;;  %v2646_v15 = vunpack.i.l.bf16 %v2645_v62 }
 0x8dd   : > { %v1912_v35 = vsel %vm868_vm3, %v4058_v32, %v2647_v14  ;;  %v1911_v17 = vsel %vm868_vm3, %v4056_v55, %v2646_v15 }
 0x8de   : > { %v2650_v56 = vpop.permute.xlu1 %2649 }
 0x8df   : > { %v2652_v28 = vunpack.i.h.bf16 %v2650_v56  ;;  %v2651_v52 = vunpack.i.l.bf16 %v2650_v56 }
 0x8e1   : > { %v1918_v26 = vsel %vm638_vm0, %v1914_v50, %v2652_v28  ;;  %v1917_v2 = vsel %vm638_vm0, %v1913_v53, %v2651_v52 }
 0x8e2   : > { %v2655_v7 = vpop.permute.xlu0 %2654 }
 0x8e3   : > { %v2657_v20 = vunpack.i.h.bf16 %v2655_v7  ;;  %v2656_v23 = vunpack.i.l.bf16 %v2655_v7 }
 0x8e5   : > { %v1915_v30 = vsel %vm638_vm0, %v1911_v17, %v2656_v23  ;;  %v1916_v43 = vsel %vm638_vm0, %v1912_v35, %v2657_v20 }
 0x91f   : > { %v2665_v12 = vpop.permute.xlu1 %2664 }
 0x920   : > { %v2667_v18 = vunpack.i.h.bf16 %v2665_v12  ;;  %v2666_v29 = vunpack.i.l.bf16 %v2665_v12 }
 0x922   : > { %v1923_v21 = vsel %vm1919_vm4, %v1918_v26, %v2667_v18  ;;  %v1922_v22 = vsel %vm1919_vm4, %v1917_v2, %v2666_v29 }
 0x923   : > { %v1925_v39 = vpack.c.bf16 %v1923_v21, %v1922_v22  ;;  %v2660_v31 = vpop.permute.xlu0 %2659 }
 0x924   : > { %v2662_v40 = vunpack.i.h.bf16 %v2660_v31  ;;  %v2661_v36 = vunpack.i.l.bf16 %v2660_v31 }
 0x926   : > { %v1920_v19 = vsel %vm1919_vm4, %v1915_v30, %v2661_v36  ;;  %v1921_v33 = vsel %vm1919_vm4, %v1916_v43, %v2662_v40 }
 0x927   : > { %v1924_v41 = vpack.c.bf16 %v1921_v33, %v1920_v19 }
 0x929   : > { %2453 = vmatprep.mubr.msk.bf16.mxu0 %vm694_vm1, %v1924_v41 }
 0x92a   : > { %2454 = vmatmul.mubr.msk.bf16.vlgmr.msra.gmra.mrb[36].mxu0 %vm694_vm1, %v1925_v39 }
 0x9fd   : > { %v2455_v32 = vpop.f32.mrb[36].mxu0 }
 0x9fe   : > { %v1999_v55 = vadd.f32 %v2455_v32, %v3711_v9  ;;  %v1982_v60 = vpop.f32.mrb[37].mxu0 }
 0x9ff   : > { %v1997_v25 = vadd.f32 %v1982_v60, %v3713_v11  ;;  %v2456_v48 = vpop.f32.mrb[38].mxu0 }
 0xa00   : > { %v2010_v57 = vadd.f32 %v2283_v59, %v1999_v55  ;;  %v2000_v61 = vadd.f32 %v2456_v48, %v3715_v13  ;;  %v1985_v1 = vpop.f32.mrb[39].mxu0 }
 0xa01   : > { %v2008_v42 = vadd.f32 %v2283_v59, %v1997_v25  ;;  %v1998_v44 = vadd.f32 %v1985_v1, %v3719_v16 }
 0xa02   : > { %2014 = vst.msk [vmem:[%s600_s16 + $0x10] sm:$0xff] %vm694_vm1, %v2010_v57  ;;  %v2011_v9 = vadd.f32 %v2283_v59, %v2000_v61 }
 0xa03   : > { %2012 = vst.msk [vmem:[%s600_s16] sm:$0xff] %vm694_vm1, %v2008_v42  ;;  %v2009_v11 = vadd.f32 %v2283_v59, %v1998_v44 }
 0xa04   : > { %2015 = vst.msk [vmem:[%s600_s16 + $0x18] sm:$0xff] %vm694_vm1, %v2011_v9 }
 0xa05   : > { %2013 = vst.msk [vmem:[%s600_s16 + $0x8] sm:$0xff] %vm694_vm1, %v2009_v11 }
 0xa06   : > { %3070 = shalt.err (!%p3067_p0)
}
 0xa07   : > { %s3071_s14 = scalar_lea.hbm %s4092_s27, 512  ;;  %s3075_s18 = scalar_lea.hbm %s4235_s6, 2048 }
 0xa08   : > { %p3072_p3 = scmp.ne.s32.totalorder %s4092_s27, %s3071_s14  ;;  %p3076_p5 = scmp.lt.u32.totalorder %s4092_s27, %s4235_s6 }
 0xa09   : > { %p3077_p6 = scmp.lt.u32.totalorder %s3075_s18, %s3071_s14  ;;  %p3079_p2 = scmp.lt.u32.totalorder %s3071_s14, %s4092_s27 }
 0xa0a   : > { %p3073_p4 = pnand %p3072_p3, %p4236_p11 }
 0xa0b   : > { %p3078_p10 = por %p3077_p6, %p3076_p5 }
 0xa0c   : > { %p3074_p9 = pneg %p3073_p4 }
 0xa0d   : > { %p3080_p7 = por %p3079_p2, %p3078_p10 }
 0xa0f   : > { %p3081_p13 = pnand %p3080_p7, %p3074_p9 }
 0xa11   : > { %3084 = shalt.err (!%p3081_p13)
}
 0xa12   : > { %s3199_s16 = smov 128  }
 0xa13   : > { %2497 = dma.vmem_to_hbm [thread:$0]  (%p4236_p11), %s4086_s2, 512, %s4092_s27, %s4098_s26, %s3199_s16, %s3199_s16, %s3195_s13  }
 0xa14 PF: > { %p2557_p8 = scmp.ge.s32.totalorder %s3171_s23, 2  ;;  %s2046_s25 = sand.u32 1, %s3159_s20  }
 0xa15   : > { %p4237_p12 = scmp.ne.s32.totalorder %s4203_s11, 0  ;;  %s2047_s5 = scalar_lea.sflag [#allocation4], %s2046_s25 }
 0xa17   : > { %p2535_p1 = pnand %p2557_p8, %p4237_p12 }
 0xa19   : > { %3142 = dma.done.wait (!%p2535_p1), %s2047_s5, 512  }
 0xa1a   : > { %3144 = vsyncadd (!%p2535_p1), %s2047_s5, 4294966784  ;;  %s4238_s17 = sld [smem:[#allocation30_spill]]  ;;  %s4239_s18 = sld [smem:[#allocation31_spill]] }
 0xa1b   : > { %p29_p11 = scmp.ge.s32.totalorder %s3424_s15, 6   ;;  %s4240_s19 = smov %s4254_s28 }
 0xa1c   : > { %s4241_s20 = smov %s3163_s21  ;;  %s4242_s21 = smov %s3167_s22 }
 0xa1d   : > { %s4243_s22 = smov %s3435_s12  ;;  %s4244_s23 = smov %s3424_s15 }
 0xa1e   :  { %31 = sbr.rel (!%p29_p11) target bundleno = 23 (0x17), region = 156 }
 0xa25   :  { %2052 = vsyncpa [#allocation3], 1 }
 0xa26   :  { %2054 = vsyncpa [#allocation3 + $0x1], 1 }
 0xa27   :  { %2055 = vsyncpa [#allocation6], 1 }
 0xa28   :  { %2056 = vsyncpa [#allocation9], 1 }
 0xa29   :  { %2057 = vsyncpa [#allocation12], 1 }
 0xa2a   :  { %2058 = vsyncpa [#allocation15], 1 }
 0xa2b   :  { %2059 = vsyncpa [#allocation18], 1 }
 0xa2c   :  { %2060 = vsyncpa [#allocation4], 1 }
 0xa2d   :  { %2062 = vsyncpa [#allocation4 + $0x1], 1 }

</bundles_post_ra>
